<compile_context>
chip_gen: v6e
topology: v6e:2x2x1
jax: 0.10.0
libtpu: 0.0.40
codegen_flags: <defaults>
</compile_context>

<pallas_src>
import functools

import jax
import jax.numpy as jnp
from jax.experimental import pallas as pl
from jax.experimental.pallas import tpu as pltpu

LATENT_D = 20
IN_DIM = 784                 # 28 * 28 (kept unpadded end-to-end)
HID = LATENT_D ** 2          # 400

# Lane-dense padded dims (multiples of 128) for the hidden / latent axes only.
HID_PAD = 512                # 4 * 128   (400 padded)
LAT_PAD = 128                # latent padded to one lane tile
ML_PAD = 2 * LAT_PAD         # mu in lanes [0,128), logvar in lanes [128,256)


def _round_up(x, m):
    return ((x + m - 1) // m) * m


def _bf16_transcendental_ok():
    """bf16 EUP/VPU exists on v6e/v7x; keep f32 transcendentals elsewhere (v5e)."""
    try:
        kind = jax.devices()[0].device_kind.lower()
    except Exception:
        return False
    return ("v6" in kind) or ("v7" in kind)


def vae_fwd_kernel(use_bf16_sigmoid,
                   x_ref, eps_ref,
                   w1_ref, b1_ref, w2_ref, b2_ref,
                   w3_ref, b3_ref, w4_ref, b4_ref,
                   xhat_ref, ml_ref):
    # ---- encoder: Linear(784, 400p) + ReLU + Linear(400p, 2*latent_p) ----
    x = x_ref[...]                                                     # (TB, 784) bf16
    h = jnp.dot(x, w1_ref[...], preferred_element_type=jnp.float32) + b1_ref[...]
    h = jnp.maximum(h, 0.0)
    ml = jnp.dot(h.astype(jnp.bfloat16), w2_ref[...],
                 preferred_element_type=jnp.float32) + b2_ref[...]     # (TB, 256) f32

    # Tile-aligned split: mu = lanes [0,128), logvar = lanes [128,256).
    mu = ml[:, :LAT_PAD]
    logvar = ml[:, LAT_PAD:]

    # ---- reparameterise: z = mu + eps * exp(0.5 * logvar) ----
    z = mu + eps_ref[...] * jnp.exp(0.5 * logvar)                      # (TB, 128) f32

    # ---- decoder: Linear(latent_p, 400p) + ReLU + Linear(400p, 784) + Sigmoid ----
    h2 = jnp.dot(z.astype(jnp.bfloat16), w3_ref[...],
                 preferred_element_type=jnp.float32) + b3_ref[...]
    h2 = jnp.maximum(h2, 0.0)
    logits = jnp.dot(h2.astype(jnp.bfloat16), w4_ref[...],
                     preferred_element_type=jnp.float32) + b4_ref[...]  # (TB, 784) f32

    if use_bf16_sigmoid:
        # v6e/v7x: bf16 EUP path; also avoids a separate f32->bf16 store cast.
        xhat_ref[...] = jax.nn.sigmoid(logits.astype(jnp.bfloat16))
    else:
        # v5e: no bf16 VPU/EUP -> compute in f32, round only at the store.
        xhat_ref[...] = jax.nn.sigmoid(logits).astype(jnp.bfloat16)

    # mu/logvar returned as a single lane-dense f32 slab; wrapper slices it.
    ml_ref[...] = ml


def init_params(key, d=LATENT_D):
    """PyTorch-nn.Linear-style init (uniform +-1/sqrt(fan_in)) at the original
    shapes, scattered into zero-padded layouts.  Weights are stored transposed
    (in_features, out_features) and cast to bf16; biases stay f32.  The 784 axes
    are left unpadded; only hidden/latent axes are padded."""
    dims = [(IN_DIM, HID), (HID, 2 * d), (d, HID), (HID, IN_DIM)]
    pads = [(IN_DIM, HID_PAD), (HID_PAD, ML_PAD), (LAT_PAD, HID_PAD), (HID_PAD, IN_DIM)]
    keys = jax.random.split(key, 2 * len(dims))
    params = {}
    for i, ((fi, fo), (pi, po)) in enumerate(zip(dims, pads)):
        bound = 1.0 / jnp.sqrt(float(fi))
        w = jax.random.uniform(keys[2 * i], (fi, fo), jnp.float32, -bound, bound)
        b = jax.random.uniform(keys[2 * i + 1], (1, fo), jnp.float32, -bound, bound)
        wp = jnp.zeros((pi, po), jnp.float32)
        bp = jnp.zeros((1, po), jnp.float32)
        if i == 1:
            # Encoder head: scatter mu cols -> lanes [0,20), logvar cols -> [128,148)
            # so the split is on a 128-lane boundary (matches torch view(-1,2,d)).
            wp = wp.at[:fi, :d].set(w[:, :d])
            wp = wp.at[:fi, LAT_PAD:LAT_PAD + d].set(w[:, d:])
            bp = bp.at[:, :d].set(b[:, :d])
            bp = bp.at[:, LAT_PAD:LAT_PAD + d].set(b[:, d:])
        else:
            wp = wp.at[:fi, :fo].set(w)
            bp = bp.at[:, :fo].set(b)
        params[f"w{i + 1}"] = wp.astype(jnp.bfloat16)
        params[f"b{i + 1}"] = bp
    return params


def vae_forward(x_nchw, params, eps):
    """Pallas-backed forward.  Returns (x_hat[bf16], mu, logvar) like the module."""
    B = x_nchw.shape[0]
    # torch .view(-1, 784): free reshape; the bf16 cast is the only input copy.
    x2 = x_nchw.reshape(B, IN_DIM).astype(jnp.bfloat16)

    # Batch tiling: big tiles amortize the ~0.35us/step pipeline overhead; 16-row
    # rounding for small batches matches bf16 sublane packing.
    TB = min(_round_up(B, 16), 512)
    B_pad = _round_up(B, TB)
    eps_pad = jnp.zeros((B_pad, LAT_PAD), jnp.float32).at[:B, :LATENT_D].set(eps)
    if B_pad != B:
        x2 = jnp.pad(x2, ((0, B_pad - B), (0, 0)))
    grid = (B_pad // TB,)

    use_bf16_sigmoid = _bf16_transcendental_ok()
    kernel = functools.partial(vae_fwd_kernel, use_bf16_sigmoid)

    def tile_spec(feat):
        return pl.BlockSpec((TB, feat), lambda i: (i, 0))

    def const_spec(arr):
        return pl.BlockSpec(arr.shape, lambda i: (0, 0))   # VMEM-resident across grid

    weight_bytes = sum(int(params[k].size) * params[k].dtype.itemsize for k in params)
    flops = 2 * B_pad * (IN_DIM * HID_PAD + HID_PAD * ML_PAD
                         + LAT_PAD * HID_PAD + HID_PAD * IN_DIM)
    transcendentals = B_pad * (LAT_PAD + IN_DIM)            # exp(logvar), sigmoid exp
    bytes_accessed = (B_pad * IN_DIM * 2                    # x in  (bf16)
                      + B_pad * LAT_PAD * 4                 # eps in
                      + B_pad * IN_DIM * 2                  # xhat out (bf16)
                      + B_pad * ML_PAD * 4                  # mu/logvar out
                      + weight_bytes)

    xhat, ml = pl.pallas_call(
        kernel,
        grid=grid,
        in_specs=[
            tile_spec(IN_DIM),                # x     (TB, 784) bf16
            tile_spec(LAT_PAD),               # eps   (TB, 128) f32
            const_spec(params["w1"]), const_spec(params["b1"]),
            const_spec(params["w2"]), const_spec(params["b2"]),
            const_spec(params["w3"]), const_spec(params["b3"]),
            const_spec(params["w4"]), const_spec(params["b4"]),
        ],
        out_specs=(tile_spec(IN_DIM), tile_spec(ML_PAD)),
        out_shape=(
            jax.ShapeDtypeStruct((B_pad, IN_DIM), jnp.bfloat16),   # xhat (bf16 stream)
            jax.ShapeDtypeStruct((B_pad, ML_PAD), jnp.float32),    # mu/logvar slab
        ),
        compiler_params=pltpu.CompilerParams(
            dimension_semantics=("parallel",),
            vmem_limit_bytes=40 * 1024 * 1024,   # fits v7x's 64 MiB per-TC; > v5e default
        ),
        cost_estimate=pl.CostEstimate(
            flops=flops, transcendentals=transcendentals, bytes_accessed=bytes_accessed),
    )(x2, eps_pad,
      params["w1"], params["b1"], params["w2"], params["b2"],
      params["w3"], params["b3"], params["w4"], params["b4"])

    if B_pad != B:
        xhat = xhat[:B]
        ml = ml[:B]
    mu = ml[:, :LATENT_D]
    logvar = ml[:, LAT_PAD:LAT_PAD + LATENT_D]
    return xhat, mu, logvar


def vae_forward_ref(x_nchw, params, eps, use_bf16_sigmoid):
    """Pure-JAX reference mirroring the kernel's bf16-operand / f32-accumulate math."""
    B = x_nchw.shape[0]
    x = x_nchw.reshape(B, IN_DIM).astype(jnp.bfloat16)
    ep = jnp.zeros((B, LAT_PAD), jnp.float32).at[:, :LATENT_D].set(eps)

    h = jnp.maximum(jnp.dot(x, params["w1"], preferred_element_type=jnp.float32)
                    + params["b1"], 0.0)
    ml = (jnp.dot(h.astype(jnp.bfloat16), params["w2"],
                  preferred_element_type=jnp.float32) + params["b2"])
    mu, logvar = ml[:, :LAT_PAD], ml[:, LAT_PAD:]
    z = mu + ep * jnp.exp(0.5 * logvar)
    h2 = jnp.maximum(jnp.dot(z.astype(jnp.bfloat16), params["w3"],
                             preferred_element_type=jnp.float32) + params["b3"], 0.0)
    logits = (jnp.dot(h2.astype(jnp.bfloat16), params["w4"],
                      preferred_element_type=jnp.float32) + params["b4"])
    if use_bf16_sigmoid:
        xhat = jax.nn.sigmoid(logits.astype(jnp.bfloat16))
    else:
        xhat = jax.nn.sigmoid(logits).astype(jnp.bfloat16)
    return xhat, mu[:, :LATENT_D], logvar[:, :LATENT_D]


if __name__ == "__main__":
    key = jax.random.PRNGKey(0)
    k_x, k_eps, k_params = jax.random.split(key, 3)

    B = 2
    x = jax.random.uniform(k_x, (B, 1, 28, 28), jnp.float32)   # NCHW, like MNIST input
    params = init_params(k_params)

    training = True
    eps = (jax.random.normal(k_eps, (B, LATENT_D), jnp.float32)
           if training else jnp.zeros((B, LATENT_D), jnp.float32))

    xhat, mu, logvar = jax.block_until_ready(vae_forward(x, params, eps))
    xhat_r, mu_r, logvar_r = vae_forward_ref(x, params, eps, _bf16_transcendental_ok())

    assert xhat.shape == (B, IN_DIM) and xhat.dtype == jnp.bfloat16
    assert mu.shape == (B, LATENT_D) and logvar.shape == (B, LATENT_D)
    # bf16 matmul operands + f32 accumulation; xhat additionally bf16-rounded.
    assert jnp.allclose(xhat.astype(jnp.float32), xhat_r.astype(jnp.float32),
                        atol=1e-2, rtol=1e-2)
    assert jnp.allclose(mu, mu_r, atol=2e-3, rtol=2e-3)
    assert jnp.allclose(logvar, logvar_r, atol=2e-3, rtol=2e-3)
    assert bool(jnp.all(jnp.isfinite(xhat.astype(jnp.float32))))

    print("KERNEL_OK")
</pallas_src>

<mosaic_0001>
module attributes {stable_mosaic.version = 11 : i64} {
  func.func @vae_fwd_kernel(%arg0: i32, %arg1: memref<16x784xbf16, #tpu.memory_space<vmem>>, %arg2: memref<16x128xf32, #tpu.memory_space<vmem>>, %arg3: memref<784x512xbf16, #tpu.memory_space<vmem>>, %arg4: memref<1x512xf32, #tpu.memory_space<vmem>>, %arg5: memref<512x256xbf16, #tpu.memory_space<vmem>>, %arg6: memref<1x256xf32, #tpu.memory_space<vmem>>, %arg7: memref<128x512xbf16, #tpu.memory_space<vmem>>, %arg8: memref<1x512xf32, #tpu.memory_space<vmem>>, %arg9: memref<512x784xbf16, #tpu.memory_space<vmem>>, %arg10: memref<1x784xf32, #tpu.memory_space<vmem>>, %arg11: memref<16x784xbf16, #tpu.memory_space<vmem>>, %arg12: memref<16x256xf32, #tpu.memory_space<vmem>>) attributes {dimension_semantics = [#tpu.dimension_semantics<parallel>], iteration_bounds = array<i64: 1>, scalar_prefetch = 0 : i64, scratch_operands = 0 : i64, tpu.core_type = #tpu.core_type<tc>, window_params = [{transform_indices = @transform_0, window_bounds = array<i64: 16, 784>}, {transform_indices = @transform_1, window_bounds = array<i64: 16, 128>}, {pipeline_mode = #tpu.pipeline_mode<synchronous>, transform_indices = @transform_2, window_bounds = array<i64: 784, 512>}, {pipeline_mode = #tpu.pipeline_mode<synchronous>, transform_indices = @transform_3, window_bounds = array<i64: 1, 512>}, {pipeline_mode = #tpu.pipeline_mode<synchronous>, transform_indices = @transform_4, window_bounds = array<i64: 512, 256>}, {pipeline_mode = #tpu.pipeline_mode<synchronous>, transform_indices = @transform_5, window_bounds = array<i64: 1, 256>}, {pipeline_mode = #tpu.pipeline_mode<synchronous>, transform_indices = @transform_6, window_bounds = array<i64: 128, 512>}, {pipeline_mode = #tpu.pipeline_mode<synchronous>, transform_indices = @transform_7, window_bounds = array<i64: 1, 512>}, {pipeline_mode = #tpu.pipeline_mode<synchronous>, transform_indices = @transform_8, window_bounds = array<i64: 512, 784>}, {pipeline_mode = #tpu.pipeline_mode<synchronous>, transform_indices = @transform_9, window_bounds = array<i64: 1, 784>}, {transform_indices = @transform_10, window_bounds = array<i64: 16, 784>}, {transform_indices = @transform_11, window_bounds = array<i64: 16, 256>}]} {
    %c0 = arith.constant 0 : index
    %c0_0 = arith.constant 0 : index
    %0 = vector.load %arg1[%c0, %c0_0] : memref<16x784xbf16, #tpu.memory_space<vmem>>, vector<16x784xbf16>
    %c0_1 = arith.constant 0 : index
    %c0_2 = arith.constant 0 : index
    %1 = vector.load %arg3[%c0_1, %c0_2] : memref<784x512xbf16, #tpu.memory_space<vmem>>, vector<784x512xbf16>
    %cst = arith.constant dense<0.000000e+00> : vector<16x512xf32>
    %2 = tpu.matmul %0, %1, %cst {dimension_numbers = #tpu.dot_dimension_numbers<[1], [0], [0], [1], [0, 0, 1, 1], [], []>} : vector<16x784xbf16>, vector<784x512xbf16>, vector<16x512xf32> -> vector<16x512xf32>
    %c0_3 = arith.constant 0 : index
    %c0_4 = arith.constant 0 : index
    %3 = vector.load %arg4[%c0_3, %c0_4] : memref<1x512xf32, #tpu.memory_space<vmem>>, vector<1x512xf32>
    %4 = vector.broadcast %3 : vector<1x512xf32> to vector<16x512xf32>
    %5 = arith.addf %2, %4 : vector<16x512xf32>
    %cst_5 = arith.constant 0.000000e+00 : f32
    %6 = vector.broadcast %cst_5 : f32 to vector<16x512xf32>
    %7 = arith.maximumf %5, %6 : vector<16x512xf32>
    %8 = arith.truncf %7 : vector<16x512xf32> to vector<16x512xbf16>
    %c0_6 = arith.constant 0 : index
    %c0_7 = arith.constant 0 : index
    %9 = vector.load %arg5[%c0_6, %c0_7] : memref<512x256xbf16, #tpu.memory_space<vmem>>, vector<512x256xbf16>
    %cst_8 = arith.constant dense<0.000000e+00> : vector<16x256xf32>
    %10 = tpu.matmul %8, %9, %cst_8 {dimension_numbers = #tpu.dot_dimension_numbers<[1], [0], [0], [1], [0, 0, 1, 1], [], []>} : vector<16x512xbf16>, vector<512x256xbf16>, vector<16x256xf32> -> vector<16x256xf32>
    %c0_9 = arith.constant 0 : index
    %c0_10 = arith.constant 0 : index
    %11 = vector.load %arg6[%c0_9, %c0_10] : memref<1x256xf32, #tpu.memory_space<vmem>>, vector<1x256xf32>
    %12 = vector.broadcast %11 : vector<1x256xf32> to vector<16x256xf32>
    %13 = arith.addf %10, %12 : vector<16x256xf32>
    %14 = vector.extract_strided_slice %13 {offsets = [0, 0], sizes = [16, 128], strides = [1, 1]} : vector<16x256xf32> to vector<16x128xf32>
    %15 = vector.extract_strided_slice %13 {offsets = [0, 128], sizes = [16, 128], strides = [1, 1]} : vector<16x256xf32> to vector<16x128xf32>
    %c0_11 = arith.constant 0 : index
    %c0_12 = arith.constant 0 : index
    %16 = vector.load %arg2[%c0_11, %c0_12] : memref<16x128xf32, #tpu.memory_space<vmem>>, vector<16x128xf32>
    %cst_13 = arith.constant 5.000000e-01 : f32
    %17 = vector.broadcast %cst_13 : f32 to vector<16x128xf32>
    %18 = arith.mulf %17, %15 : vector<16x128xf32>
    %19 = math.exp %18 : vector<16x128xf32>
    %20 = arith.mulf %16, %19 : vector<16x128xf32>
    %21 = arith.addf %14, %20 : vector<16x128xf32>
    %22 = arith.truncf %21 : vector<16x128xf32> to vector<16x128xbf16>
    %c0_14 = arith.constant 0 : index
    %c0_15 = arith.constant 0 : index
    %23 = vector.load %arg7[%c0_14, %c0_15] : memref<128x512xbf16, #tpu.memory_space<vmem>>, vector<128x512xbf16>
    %cst_16 = arith.constant dense<0.000000e+00> : vector<16x512xf32>
    %24 = tpu.matmul %22, %23, %cst_16 {dimension_numbers = #tpu.dot_dimension_numbers<[1], [0], [0], [1], [0, 0, 1, 1], [], []>} : vector<16x128xbf16>, vector<128x512xbf16>, vector<16x512xf32> -> vector<16x512xf32>
    %c0_17 = arith.constant 0 : index
    %c0_18 = arith.constant 0 : index
    %25 = vector.load %arg8[%c0_17, %c0_18] : memref<1x512xf32, #tpu.memory_space<vmem>>, vector<1x512xf32>
    %26 = vector.broadcast %25 : vector<1x512xf32> to vector<16x512xf32>
    %27 = arith.addf %24, %26 : vector<16x512xf32>
    %cst_19 = arith.constant 0.000000e+00 : f32
    %28 = vector.broadcast %cst_19 : f32 to vector<16x512xf32>
    %29 = arith.maximumf %27, %28 : vector<16x512xf32>
    %30 = arith.truncf %29 : vector<16x512xf32> to vector<16x512xbf16>
    %c0_20 = arith.constant 0 : index
    %c0_21 = arith.constant 0 : index
    %31 = vector.load %arg9[%c0_20, %c0_21] : memref<512x784xbf16, #tpu.memory_space<vmem>>, vector<512x784xbf16>
    %cst_22 = arith.constant dense<0.000000e+00> : vector<16x784xf32>
    %32 = tpu.matmul %30, %31, %cst_22 {dimension_numbers = #tpu.dot_dimension_numbers<[1], [0], [0], [1], [0, 0, 1, 1], [], []>} : vector<16x512xbf16>, vector<512x784xbf16>, vector<16x784xf32> -> vector<16x784xf32>
    %c0_23 = arith.constant 0 : index
    %c0_24 = arith.constant 0 : index
    %33 = vector.load %arg10[%c0_23, %c0_24] : memref<1x784xf32, #tpu.memory_space<vmem>>, vector<1x784xf32>
    %34 = vector.broadcast %33 : vector<1x784xf32> to vector<16x784xf32>
    %35 = arith.addf %32, %34 : vector<16x784xf32>
    %36 = arith.negf %35 : vector<16x784xf32>
    %37 = math.exp %36 : vector<16x784xf32>
    %cst_25 = arith.constant 1.000000e+00 : f32
    %38 = vector.broadcast %cst_25 : f32 to vector<16x784xf32>
    %39 = arith.addf %38, %37 : vector<16x784xf32>
    %40 = arith.divf %38, %39 : vector<16x784xf32>
    %41 = arith.truncf %40 : vector<16x784xf32> to vector<16x784xbf16>
    %c0_26 = arith.constant 0 : index
    %c0_27 = arith.constant 0 : index
    %42 = vector.load %arg11[%c0_26, %c0_27] : memref<16x784xbf16, #tpu.memory_space<vmem>>, vector<16x784xbf16>
    tpu.vector_store %arg11[%c0_26, %c0_27], %41 {strides = array<i32>} : memref<16x784xbf16, #tpu.memory_space<vmem>>, vector<16x784xbf16>,
    %c0_28 = arith.constant 0 : index
    %c0_29 = arith.constant 0 : index
    %43 = vector.load %arg12[%c0_28, %c0_29] : memref<16x256xf32, #tpu.memory_space<vmem>>, vector<16x256xf32>
    tpu.vector_store %arg12[%c0_28, %c0_29], %13 {strides = array<i32>} : memref<16x256xf32, #tpu.memory_space<vmem>>, vector<16x256xf32>,
    return
  }
  func.func @transform_0(%arg0: i32) -> (i32, i32) {
    %c0_i32 = arith.constant 0 : i32
    %c0_i32_0 = arith.constant 0 : i32
    return %arg0, %c0_i32 : i32, i32
  }
  func.func @transform_1(%arg0: i32) -> (i32, i32) {
    %c0_i32 = arith.constant 0 : i32
    %c0_i32_0 = arith.constant 0 : i32
    return %arg0, %c0_i32 : i32, i32
  }
  func.func @transform_2(%arg0: i32) -> (i32, i32) {
    %c0_i32 = arith.constant 0 : i32
    %c0_i32_0 = arith.constant 0 : i32
    %c0_i32_1 = arith.constant 0 : i32
    return %c0_i32, %c0_i32_0 : i32, i32
  }
  func.func @transform_3(%arg0: i32) -> (i32, i32) {
    %c0_i32 = arith.constant 0 : i32
    %c0_i32_0 = arith.constant 0 : i32
    %c0_i32_1 = arith.constant 0 : i32
    return %c0_i32, %c0_i32_0 : i32, i32
  }
  func.func @transform_4(%arg0: i32) -> (i32, i32) {
    %c0_i32 = arith.constant 0 : i32
    %c0_i32_0 = arith.constant 0 : i32
    %c0_i32_1 = arith.constant 0 : i32
    return %c0_i32, %c0_i32_0 : i32, i32
  }
  func.func @transform_5(%arg0: i32) -> (i32, i32) {
    %c0_i32 = arith.constant 0 : i32
    %c0_i32_0 = arith.constant 0 : i32
    %c0_i32_1 = arith.constant 0 : i32
    return %c0_i32, %c0_i32_0 : i32, i32
  }
  func.func @transform_6(%arg0: i32) -> (i32, i32) {
    %c0_i32 = arith.constant 0 : i32
    %c0_i32_0 = arith.constant 0 : i32
    %c0_i32_1 = arith.constant 0 : i32
    return %c0_i32, %c0_i32_0 : i32, i32
  }
  func.func @transform_7(%arg0: i32) -> (i32, i32) {
    %c0_i32 = arith.constant 0 : i32
    %c0_i32_0 = arith.constant 0 : i32
    %c0_i32_1 = arith.constant 0 : i32
    return %c0_i32, %c0_i32_0 : i32, i32
  }
  func.func @transform_8(%arg0: i32) -> (i32, i32) {
    %c0_i32 = arith.constant 0 : i32
    %c0_i32_0 = arith.constant 0 : i32
    %c0_i32_1 = arith.constant 0 : i32
    return %c0_i32, %c0_i32_0 : i32, i32
  }
  func.func @transform_9(%arg0: i32) -> (i32, i32) {
    %c0_i32 = arith.constant 0 : i32
    %c0_i32_0 = arith.constant 0 : i32
    %c0_i32_1 = arith.constant 0 : i32
    return %c0_i32, %c0_i32_0 : i32, i32
  }
  func.func @transform_10(%arg0: i32) -> (i32, i32) {
    %c0_i32 = arith.constant 0 : i32
    %c0_i32_0 = arith.constant 0 : i32
    return %arg0, %c0_i32 : i32, i32
  }
  func.func @transform_11(%arg0: i32) -> (i32, i32) {
    %c0_i32 = arith.constant 0 : i32
    %c0_i32_0 = arith.constant 0 : i32
    return %arg0, %c0_i32 : i32, i32
  }
}

</mosaic_0001>

<bundles_post_ra>
// kernel: tpu_custom_call.1
= control target key start
LH: loop header
LB: loop body
LE: loop exit
PB: predicated region body
PF: predicated region fallthrough
CT: control target
= control target key end

     0   :  { %17 = vsyncpa [#allocation3], 0  ;;  %vm1281_vm0 = vcmask 130048   ;;  %s7642_s0 = inlined_call_operand.vmem [shape: bf16[16,784], index: 0, kind: input, shape index: {}]   ;;  %s7643_s1 = inlined_call_operand.vmem [shape: f32[16,128], index: 1, kind: input, shape index: {}]   ;;  %s7644_s2 = inlined_call_operand.vmem [shape: bf16[784,512], index: 2, kind: input, shape index: {}]   ;;  %s7645_s3 = inlined_call_operand.vmem [shape: f32[1,512], index: 3, kind: input, shape index: {}]   ;;  %s7646_s4 = inlined_call_operand.vmem [shape: bf16[512,256], index: 4, kind: input, shape index: {}]   ;;  %s7647_s5 = inlined_call_operand.vmem [shape: f32[1,256], index: 5, kind: input, shape index: {}]   ;;  %s7648_s6 = inlined_call_operand.vmem [shape: bf16[128,512], index: 6, kind: input, shape index: {}]   ;;  %s7649_s7 = inlined_call_operand.vmem [shape: f32[1,512], index: 7, kind: input, shape index: {}]   ;;  %s7650_s8 = inlined_call_operand.vmem [shape: bf16[512,784], index: 8, kind: input, shape index: {}]   ;;  %s7651_s9 = inlined_call_operand.vmem [shape: f32[1,784], index: 9, kind: input, shape index: {}]   ;;  %s7652_s10 = inlined_call_operand.hbm [shape: bf16[16,784], index: 10, kind: output, shape index: {0}]   ;;  %s7653_s11 = inlined_call_operand.hbm [shape: f32[16,256], index: 11, kind: output, shape index: {1}]  }
   0x1   :  { %v5012_v0 = vld [vmem:[%s7644_s2 + $0xe4] ss:$16 sps:$4 sm:$0xff]   ;;  %v5016_v2 = vld [vmem:[%s7644_s2 + $0xe0] ss:$16 sps:$4 sm:$0xff]   ;;  %v6111_v51 = vld [vmem:[%s7642_s0 + $0xc] ss:$28 sps:$4 sm:$0xff]  }
   0x2   :  { %v5014_v1 = vld [vmem:[%s7644_s2 + $0x2e4] ss:$16 sps:$4 sm:$0xff]   ;;  %1285 = vmatprep.subr.bf16.mxu0 %v5012_v0  ;;  %v5017_v3 = vld [vmem:[%s7644_s2 + $0x2e0] ss:$16 sps:$4 sm:$0xff]   ;;  %1360 = vmatprep.mubr.bf16.mxu1 %v6111_v51 }
   0x3   :  { %1328 = vmatprep.subr.bf16.mxu1 %v5014_v1  ;;  %v5018_v4 = vld [vmem:[%s7644_s2 + $0xc4] ss:$16 sps:$4 sm:$0xff]   ;;  %1286 = vmatpush1.bf16.msra.mxu0 %v5016_v2  ;;  %v5022_v6 = vld [vmem:[%s7644_s2 + $0xc0] ss:$16 sps:$4 sm:$0xff]  }
   0x4   :  { %1329 = vmatpush1.bf16.msra.mxu1 %v5017_v3  ;;  %v5020_v5 = vld [vmem:[%s7644_s2 + $0x2c4] ss:$16 sps:$4 sm:$0xff]   ;;  %1287 = vmatprep.subr.bf16.mxu0 %v5018_v4  ;;  %v5023_v7 = vld [vmem:[%s7644_s2 + $0x2c0] ss:$16 sps:$4 sm:$0xff]  }
   0x5   :  { %1330 = vmatprep.subr.bf16.mxu1 %v5020_v5  ;;  %v5024_v8 = vld [vmem:[%s7644_s2 + $0xa4] ss:$16 sps:$4 sm:$0xff]   ;;  %v5028_v10 = vld [vmem:[%s7644_s2 + $0xa0] ss:$16 sps:$4 sm:$0xff]  }
   0x6   :  { %v5026_v9 = vld [vmem:[%s7644_s2 + $0x2a4] ss:$16 sps:$4 sm:$0xff]   ;;  %v5029_v11 = vld [vmem:[%s7644_s2 + $0x2a0] ss:$16 sps:$4 sm:$0xff]  }
   0x7   :  { %1288 = vmatpush1.bf16.msra.mxu0 %v5022_v6  ;;  %v5030_v12 = vld [vmem:[%s7644_s2 + $0x84] ss:$16 sps:$4 sm:$0xff]   ;;  %v5034_v14 = vld [vmem:[%s7644_s2 + $0x80] ss:$16 sps:$4 sm:$0xff]  }
   0x8   :  { %1331 = vmatpush1.bf16.msra.mxu1 %v5023_v7  ;;  %1289 = vmatprep.subr.bf16.mxu0 %v5024_v8  ;;  %v5032_v13 = vld [vmem:[%s7644_s2 + $0x284] ss:$16 sps:$4 sm:$0xff]   ;;  %v5035_v15 = vld [vmem:[%s7644_s2 + $0x280] ss:$16 sps:$4 sm:$0xff]  }
   0x9   :  { %1332 = vmatprep.subr.bf16.mxu1 %v5026_v9  ;;  %v5036_v16 = vld [vmem:[%s7644_s2 + $0x64] ss:$16 sps:$4 sm:$0xff]   ;;  %v5040_v18 = vld [vmem:[%s7644_s2 + $0x60] ss:$16 sps:$4 sm:$0xff]   ;;  %v5125_v9 = vld [vmem:[%s7644_s2 + $0xec] ss:$16 sps:$4 sm:$0xff]  }
   0xa   :  { %v5038_v17 = vld [vmem:[%s7644_s2 + $0x264] ss:$16 sps:$4 sm:$0xff]   ;;  %v5041_v19 = vld [vmem:[%s7644_s2 + $0x260] ss:$16 sps:$4 sm:$0xff]  }
   0xb   :  { %1290 = vmatpush1.bf16.msra.mxu0 %v5028_v10  ;;  %v5042_v20 = vld [vmem:[%s7644_s2 + $0x44] ss:$16 sps:$4 sm:$0xff]   ;;  %v5046_v22 = vld [vmem:[%s7644_s2 + $0x40] ss:$16 sps:$4 sm:$0xff]  }
   0xc   :  { %1333 = vmatpush1.bf16.msra.mxu1 %v5029_v11  ;;  %1291 = vmatprep.subr.bf16.mxu0 %v5030_v12  ;;  %v5044_v21 = vld [vmem:[%s7644_s2 + $0x244] ss:$16 sps:$4 sm:$0xff]   ;;  %v5047_v23 = vld [vmem:[%s7644_s2 + $0x240] ss:$16 sps:$4 sm:$0xff]   ;;  %v5886_v11 = vmov 0  }
   0xd   :  { %1334 = vmatprep.subr.bf16.mxu1 %v5032_v13  ;;  %v5048_v24 = vld [vmem:[%s7644_s2 + $0x24] ss:$16 sps:$4 sm:$0xff]   ;;  %v5052_v26 = vld [vmem:[%s7644_s2 + $0x20] ss:$16 sps:$4 sm:$0xff]   ;;  %v5123_v13 = vld [vmem:[%s7644_s2 + $0xe8] ss:$16 sps:$4 sm:$0xff]  }
   0xe   :  { %v5050_v25 = vld [vmem:[%s7644_s2 + $0x224] ss:$16 sps:$4 sm:$0xff]   ;;  %v5053_v27 = vld [vmem:[%s7644_s2 + $0x220] ss:$16 sps:$4 sm:$0xff]  }
   0xf   :  { %1292 = vmatpush1.bf16.msra.mxu0 %v5034_v14  ;;  %v5054_v28 = vld [vmem:[%s7644_s2 + $0x4] ss:$16 sps:$4 sm:$0xff]   ;;  %v5058_v30 = vld [vmem:[%s7644_s2] ss:$16 sps:$4 sm:$0xff]  }
  0x10   :  { %1335 = vmatpush1.bf16.msra.mxu1 %v5035_v15  ;;  %1293 = vmatprep.subr.bf16.mxu0 %v5036_v16  ;;  %v5056_v29 = vld [vmem:[%s7644_s2 + $0x204] ss:$16 sps:$4 sm:$0xff]   ;;  %v5059_v31 = vld [vmem:[%s7644_s2 + $0x200] ss:$16 sps:$4 sm:$0xff]   ;;  %v5132_v16 = vld [vmem:[%s7644_s2 + $0xcc] ss:$16 sps:$4 sm:$0xff]  }
  0x11   :  { %1336 = vmatprep.subr.bf16.mxu1 %v5038_v17  ;;  %v5060_v32 = vld [vmem:[%s7644_s2 + $0x1e4] ss:$16 sps:$4 sm:$0xff]   ;;  %v5064_v34 = vld [vmem:[%s7644_s2 + $0x1e0] ss:$16 sps:$4 sm:$0xff]  }
  0x12   :  { %v5062_v33 = vld [vmem:[%s7644_s2 + $0x3e4] ss:$16 sps:$4 sm:$0xff]   ;;  %v5065_v35 = vld [vmem:[%s7644_s2 + $0x3e0] ss:$16 sps:$4 sm:$0xff]  }
  0x13   :  { %1294 = vmatpush1.bf16.msra.mxu0 %v5040_v18  ;;  %v5066_v36 = vld [vmem:[%s7644_s2 + $0x1c4] ss:$16 sps:$4 sm:$0xff]   ;;  %v5070_v38 = vld [vmem:[%s7644_s2 + $0x1c0] ss:$16 sps:$4 sm:$0xff]   ;;  %v5130_v18 = vld [vmem:[%s7644_s2 + $0xc8] ss:$16 sps:$4 sm:$0xff]  }
  0x14   :  { %1337 = vmatpush1.bf16.msra.mxu1 %v5041_v19  ;;  %1295 = vmatprep.subr.bf16.mxu0 %v5042_v20  ;;  %v5068_v37 = vld [vmem:[%s7644_s2 + $0x3c4] ss:$16 sps:$4 sm:$0xff]   ;;  %v5071_v39 = vld [vmem:[%s7644_s2 + $0x3c0] ss:$16 sps:$4 sm:$0xff]   ;;  %v5138_v20 = vld [vmem:[%s7644_s2 + $0xac] ss:$16 sps:$4 sm:$0xff]  }
  0x15   :  { %1338 = vmatprep.subr.bf16.mxu1 %v5044_v21  ;;  %v5072_v40 = vld [vmem:[%s7644_s2 + $0x1a4] ss:$16 sps:$4 sm:$0xff]   ;;  %v5076_v42 = vld [vmem:[%s7644_s2 + $0x1a0] ss:$16 sps:$4 sm:$0xff]  }
  0x16   :  { %v5074_v41 = vld [vmem:[%s7644_s2 + $0x3a4] ss:$16 sps:$4 sm:$0xff]   ;;  %v5077_v43 = vld [vmem:[%s7644_s2 + $0x3a0] ss:$16 sps:$4 sm:$0xff]  }
  0x17   :  { %1296 = vmatpush1.bf16.msra.mxu0 %v5046_v22  ;;  %v5078_v44 = vld [vmem:[%s7644_s2 + $0x184] ss:$16 sps:$4 sm:$0xff]   ;;  %v5082_v46 = vld [vmem:[%s7644_s2 + $0x180] ss:$16 sps:$4 sm:$0xff]   ;;  %v5136_v22 = vld [vmem:[%s7644_s2 + $0xa8] ss:$16 sps:$4 sm:$0xff]  }
  0x18   :  { %1339 = vmatpush1.bf16.msra.mxu1 %v5047_v23  ;;  %1297 = vmatprep.subr.bf16.mxu0 %v5048_v24  ;;  %v5080_v45 = vld [vmem:[%s7644_s2 + $0x384] ss:$16 sps:$4 sm:$0xff]   ;;  %v5083_v47 = vld [vmem:[%s7644_s2 + $0x380] ss:$16 sps:$4 sm:$0xff]   ;;  %v5144_v24 = vld [vmem:[%s7644_s2 + $0x8c] ss:$16 sps:$4 sm:$0xff]  }
  0x19   :  { %1340 = vmatprep.subr.bf16.mxu1 %v5050_v25  ;;  %v5084_v48 = vld [vmem:[%s7644_s2 + $0x164] ss:$16 sps:$4 sm:$0xff]   ;;  %v5088_v52 = vld [vmem:[%s7644_s2 + $0x160] ss:$16 sps:$4 sm:$0xff]  }
  0x1a   :  { %v6103_v49 = vld [vmem:[%s7642_s0 + $0x4] ss:$28 sps:$4 sm:$0xff]   ;;  %v5129_v14 = vld [vmem:[%s7642_s0 + $0x18] ss:$28 sps:$4 sm:$0xff]  }
  0x1b   :  { %1298 = vmatpush1.bf16.msra.mxu0 %v5052_v26  ;;  %v5086_v50 = vld [vmem:[%s7644_s2 + $0x364] ss:$16 sps:$4 sm:$0xff]   ;;  %1317 = vmatprep.mubr.bf16.mxu0 %v6103_v49  ;;  %v5089_v53 = vld [vmem:[%s7644_s2 + $0x360] ss:$16 sps:$4 sm:$0xff]   ;;  %v5142_v26 = vld [vmem:[%s7644_s2 + $0x88] ss:$16 sps:$4 sm:$0xff]  }
  0x1c   :  { %1341 = vmatpush1.bf16.msra.mxu1 %v5053_v27  ;;  %1299 = vmatprep.subr.bf16.mxu0 %v5054_v28  ;;  %v5090_v54 = vld [vmem:[%s7644_s2 + $0x144] ss:$16 sps:$4 sm:$0xff]   ;;  %v5094_v56 = vld [vmem:[%s7644_s2 + $0x140] ss:$16 sps:$4 sm:$0xff]   ;;  %v5150_v28 = vld [vmem:[%s7644_s2 + $0x6c] ss:$16 sps:$4 sm:$0xff]  }
  0x1d   :  { %1342 = vmatprep.subr.bf16.mxu1 %v5056_v29  ;;  %v5092_v55 = vld [vmem:[%s7644_s2 + $0x344] ss:$16 sps:$4 sm:$0xff]   ;;  %v5095_v57 = vld [vmem:[%s7644_s2 + $0x340] ss:$16 sps:$4 sm:$0xff]  }
  0x1e   :  { %v5096_v58 = vld [vmem:[%s7644_s2 + $0x124] ss:$16 sps:$4 sm:$0xff]   ;;  %v5100_v60 = vld [vmem:[%s7644_s2 + $0x120] ss:$16 sps:$4 sm:$0xff]  }
  0x1f   :  { %1300 = vmatpush1.bf16.msra.mxu0 %v5058_v30  ;;  %v5098_v59 = vld [vmem:[%s7644_s2 + $0x324] ss:$16 sps:$4 sm:$0xff]   ;;  %v5101_v61 = vld [vmem:[%s7644_s2 + $0x320] ss:$16 sps:$4 sm:$0xff]   ;;  %v5148_v30 = vld [vmem:[%s7644_s2 + $0x68] ss:$16 sps:$4 sm:$0xff]  }
  0x20   :  { %1343 = vmatpush1.bf16.msra.mxu1 %v5059_v31  ;;  %1301 = vmatprep.subr.bf16.mxu0 %v5060_v32  ;;  %v5102_v62 = vld [vmem:[%s7644_s2 + $0x104] ss:$16 sps:$4 sm:$0xff]   ;;  %v5106_v0 = vld [vmem:[%s7644_s2 + $0x100] ss:$16 sps:$4 sm:$0xff]   ;;  %v5156_v32 = vld [vmem:[%s7644_s2 + $0x4c] ss:$16 sps:$4 sm:$0xff]  }
  0x21   :  { %1344 = vmatprep.subr.bf16.mxu1 %v5062_v33  ;;  %v5104_v63 = vld [vmem:[%s7644_s2 + $0x304] ss:$16 sps:$4 sm:$0xff]   ;;  %v5107_v1 = vld [vmem:[%s7644_s2 + $0x300] ss:$16 sps:$4 sm:$0xff]  }
  0x22   :  { %v5116_v2 = vld [vmem:[%s7644_s2 + $0x4e4] ss:$16 sps:$4 sm:$0xff]   ;;  %v6166_v4 = vld [vmem:[%s7642_s0] ss:$28 sps:$4 sm:$0xff]  }
  0x23   :  { %1302 = vmatpush2.bf16.msra.mxu0 %v5064_v34  ;;  %v5119_v3 = vld [vmem:[%s7644_s2 + $0x604] ss:$16 sps:$4 sm:$0xff]   ;;  %v5114_v6 = vld [vmem:[%s7644_s2 + $0x4e0] ss:$16 sps:$4 sm:$0xff]  }
  0x24   :  { %1345 = vmatpush2.bf16.msra.mxu1 %v5065_v35  ;;  %1303 = vmatprep.subr.bf16.mxu0 %v5066_v36  ;;  %v5111_v5 = vld [vmem:[%s7642_s0 + $0x8] ss:$28 sps:$4 sm:$0xff]   ;;  %v5117_v7 = vld [vmem:[%s7644_s2 + $0x600] ss:$16 sps:$4 sm:$0xff]  }
  0x25   :  { %1346 = vmatprep.subr.bf16.mxu1 %v5068_v37  ;;  %v5122_v8 = vld [vmem:[%s7644_s2 + $0x4c4] ss:$16 sps:$4 sm:$0xff]   ;;  %v5120_v10 = vld [vmem:[%s7644_s2 + $0x4c0] ss:$16 sps:$4 sm:$0xff]   ;;  %v5154_v35 = vld [vmem:[%s7644_s2 + $0x48] ss:$16 sps:$4 sm:$0xff]  }
  0x26   :  { %v5128_v12 = vld [vmem:[%s7644_s2 + $0x4a4] ss:$16 sps:$4 sm:$0xff]   ;;  %v5126_v15 = vld [vmem:[%s7644_s2 + $0x4a0] ss:$16 sps:$4 sm:$0xff]   ;;  %v5162_v37 = vld [vmem:[%s7644_s2 + $0x2c] ss:$16 sps:$4 sm:$0xff]  }
  0x27   :  { %1304 = vmatpush2.bf16.msra.mxu0 %v5070_v38  ;;  %v5135_v17 = vld [vmem:[%s7644_s2 + $0x484] ss:$16 sps:$4 sm:$0xff]   ;;  %v5133_v19 = vld [vmem:[%s7644_s2 + $0x480] ss:$16 sps:$4 sm:$0xff]  }
  0x28   :  { %1347 = vmatpush2.bf16.msra.mxu1 %v5071_v39  ;;  %1305 = vmatprep.subr.bf16.mxu0 %v5072_v40  ;;  %v5141_v21 = vld [vmem:[%s7644_s2 + $0x464] ss:$16 sps:$4 sm:$0xff]   ;;  %v5139_v23 = vld [vmem:[%s7644_s2 + $0x460] ss:$16 sps:$4 sm:$0xff]   ;;  %v5160_v39 = vld [vmem:[%s7644_s2 + $0x28] ss:$16 sps:$4 sm:$0xff]  }
  0x29   :  { %1348 = vmatprep.subr.bf16.mxu1 %v5074_v41  ;;  %v5147_v25 = vld [vmem:[%s7644_s2 + $0x444] ss:$16 sps:$4 sm:$0xff]   ;;  %v5145_v27 = vld [vmem:[%s7644_s2 + $0x440] ss:$16 sps:$4 sm:$0xff]   ;;  %v5168_v41 = vld [vmem:[%s7644_s2 + $0xc] ss:$16 sps:$4 sm:$0xff]  }
  0x2a   :  { %v5153_v29 = vld [vmem:[%s7644_s2 + $0x424] ss:$16 sps:$4 sm:$0xff]   ;;  %v5151_v31 = vld [vmem:[%s7644_s2 + $0x420] ss:$16 sps:$4 sm:$0xff]  }
  0x2b   :  { %1306 = vmatpush2.bf16.msra.mxu0 %v5076_v42  ;;  %v6256_v33 = vld [vmem:[%s7642_s0 + $0x14] ss:$28 sps:$4 sm:$0xff]  }
  0x2c   :  { %1349 = vmatpush2.bf16.msra.mxu1 %v5077_v43  ;;  %1307 = vmatprep.subr.bf16.mxu0 %v5078_v44  ;;  %v5159_v34 = vld [vmem:[%s7644_s2 + $0x404] ss:$16 sps:$4 sm:$0xff]   ;;  %v5157_v36 = vld [vmem:[%s7644_s2 + $0x400] ss:$16 sps:$4 sm:$0xff]   ;;  %v5166_v43 = vld [vmem:[%s7644_s2 + $0x8] ss:$16 sps:$4 sm:$0xff]  }
  0x2d   :  { %1350 = vmatprep.subr.bf16.mxu1 %v5080_v45  ;;  %v5165_v38 = vld [vmem:[%s7644_s2 + $0x5e4] ss:$16 sps:$4 sm:$0xff]   ;;  %v5163_v40 = vld [vmem:[%s7644_s2 + $0x5e0] ss:$16 sps:$4 sm:$0xff]   ;;  %v5174_v45 = vld [vmem:[%s7644_s2 + $0x1ec] ss:$16 sps:$4 sm:$0xff]  }
  0x2e   :  { %v5171_v42 = vld [vmem:[%s7644_s2 + $0x5c4] ss:$16 sps:$4 sm:$0xff]   ;;  %v5169_v44 = vld [vmem:[%s7644_s2 + $0x5c0] ss:$16 sps:$4 sm:$0xff]  }
  0x2f   :  { %1308 = vmatpush2.bf16.msra.mxu0 %v5082_v46  ;;  %v5177_v46 = vld [vmem:[%s7644_s2 + $0x5a4] ss:$16 sps:$4 sm:$0xff]  }
  0x30   :  { %1351 = vmatpush2.bf16.msra.mxu1 %v5083_v47  ;;  %1309 = vmatprep.subr.bf16.mxu0 %v5084_v48  ;;  %v5172_v47 = vld [vmem:[%s7644_s2 + $0x1e8] ss:$16 sps:$4 sm:$0xff]   ;;  %v5175_v48 = vld [vmem:[%s7644_s2 + $0x5a0] ss:$16 sps:$4 sm:$0xff]  }
  0x31   :  { %1352 = vmatprep.subr.bf16.mxu1 %v5086_v50  ;;  %v5183_v50 = vld [vmem:[%s7644_s2 + $0x584] ss:$16 sps:$4 sm:$0xff]  }
  0x33   :  { %1310 = vmatpush2.bf16.msra.mxu0 %v5088_v52  ;;  %v5178_v52 = vld [vmem:[%s7644_s2 + $0x1c8] ss:$16 sps:$4 sm:$0xff]  }
  0x34   :  { %1353 = vmatpush2.bf16.msra.mxu1 %v5089_v53  ;;  %1311 = vmatprep.subr.bf16.mxu0 %v5090_v54  ;;  %v5181_v53 = vld [vmem:[%s7644_s2 + $0x580] ss:$16 sps:$4 sm:$0xff]   ;;  %v5186_v54 = vld [vmem:[%s7644_s2 + $0x1ac] ss:$16 sps:$4 sm:$0xff]  }
  0x35   :  { %1354 = vmatprep.subr.bf16.mxu1 %v5092_v55  ;;  %v5189_v55 = vld [vmem:[%s7644_s2 + $0x564] ss:$16 sps:$4 sm:$0xff]  }
  0x37   :  { %1312 = vmatpush2.bf16.msra.mxu0 %v5094_v56  ;;  %v5184_v56 = vld [vmem:[%s7644_s2 + $0x1a8] ss:$16 sps:$4 sm:$0xff]  }
  0x38   :  { %1355 = vmatpush2.bf16.msra.mxu1 %v5095_v57  ;;  %1313 = vmatprep.subr.bf16.mxu0 %v5096_v58  ;;  %v5187_v57 = vld [vmem:[%s7644_s2 + $0x560] ss:$16 sps:$4 sm:$0xff]   ;;  %v5192_v58 = vld [vmem:[%s7644_s2 + $0x18c] ss:$16 sps:$4 sm:$0xff]  }
  0x39   :  { %1356 = vmatprep.subr.bf16.mxu1 %v5098_v59  ;;  %v5195_v59 = vld [vmem:[%s7644_s2 + $0x544] ss:$16 sps:$4 sm:$0xff]  }
  0x3b   :  { %1314 = vmatpush2.bf16.msra.mxu0 %v5100_v60  ;;  %v5190_v60 = vld [vmem:[%s7644_s2 + $0x188] ss:$16 sps:$4 sm:$0xff]  }
  0x3c   :  { %1357 = vmatpush2.bf16.msra.mxu1 %v5101_v61  ;;  %1315 = vmatprep.subr.bf16.mxu0 %v5102_v62  ;;  %v5193_v61 = vld [vmem:[%s7644_s2 + $0x540] ss:$16 sps:$4 sm:$0xff]   ;;  %v5198_v62 = vld [vmem:[%s7644_s2 + $0x16c] ss:$16 sps:$4 sm:$0xff]  }
  0x3d   :  { %1358 = vmatprep.subr.bf16.mxu1 %v5104_v63  ;;  %v5201_v63 = vld [vmem:[%s7644_s2 + $0x524] ss:$16 sps:$4 sm:$0xff]  }
  0x3f   :  { %1316 = vmatpush2.bf16.msra.mxu0 %v5106_v0  ;;  %v5196_v0 = vld [vmem:[%s7644_s2 + $0x168] ss:$16 sps:$4 sm:$0xff]  }
  0x40   :  { %1359 = vmatpush2.bf16.msra.mxu1 %v5107_v1  ;;  %1371 = vmatprep.subr.bf16.mxu0 %v5116_v2  ;;  %v5199_v1 = vld [vmem:[%s7644_s2 + $0x520] ss:$16 sps:$4 sm:$0xff]   ;;  %v5204_v2 = vld [vmem:[%s7644_s2 + $0x14c] ss:$16 sps:$4 sm:$0xff]  }
  0x41   :  { %1428 = vmatprep.subr.bf16.mxu1 %v5119_v3  ;;  %v5207_v3 = vld [vmem:[%s7644_s2 + $0x504] ss:$16 sps:$4 sm:$0xff]  }
  0x42   :  { %1318 = vmatmul.mubr.bf16.vlgmr.msra.gmra.mxu0 %v6166_v4 }
  0x43   :  { %1361 = vmatmul.mubr.bf16.vlgmr.msra.gmra.mxu1 %v5111_v5  ;;  %1372 = vmatpush1.bf16.msra.mxu0 %v5114_v6  ;;  %v5202_v5 = vld [vmem:[%s7644_s2 + $0x148] ss:$16 sps:$4 sm:$0xff]   ;;  %v5205_v6 = vld [vmem:[%s7644_s2 + $0x500] ss:$16 sps:$4 sm:$0xff]  }
  0x44   :  { %1429 = vmatpush1.bf16.msra.mxu1 %v5117_v7  ;;  %1373 = vmatprep.subr.bf16.mxu0 %v5122_v8  ;;  %v5213_v7 = vld [vmem:[%s7644_s2 + $0x12c] ss:$16 sps:$4 sm:$0xff]  }
  0x45   :  { %1446 = vmatprep.mubr.bf16.mxu1 %v5886_v11  ;;  %1457 = vmatprep.subr.bf16.mxu1 %v5125_v9  ;;  %v5216_v8 = vld [vmem:[%s7644_s2 + $0x2ec] ss:$16 sps:$4 sm:$0xff]  }
  0x46   :  { %1403 = vmatprep.mubr.bf16.mxu0 %v6256_v33  ;;  %v6373_v9 = vld [vmem:[%s7642_s0 + $0x10] ss:$28 sps:$4 sm:$0xff]  }
  0x47   :  { %1374 = vmatpush1.bf16.msra.mxu0 %v5120_v10  ;;  %v5211_v10 = vld [vmem:[%s7644_s2 + $0x128] ss:$16 sps:$4 sm:$0xff]  }
  0x48   :  { %1375 = vmatprep.subr.bf16.mxu0 %v5128_v12  ;;  %v5214_v12 = vld [vmem:[%s7644_s2 + $0x2e8] ss:$16 sps:$4 sm:$0xff]  }
  0x4b   :  { %4609 = vmatmul.mubr.msk.bf16.vlgmr.msra.gmra.mxu1 %vm1281_vm0, %v5129_v14  ;;  %1376 = vmatpush1.bf16.msra.mxu0 %v5126_v15  ;;  %v5222_v14 = vld [vmem:[%s7644_s2 + $0x2cc] ss:$16 sps:$4 sm:$0xff]   ;;  %v5217_v15 = vld [vmem:[%s7644_s2 + $0x108] ss:$16 sps:$4 sm:$0xff]  }
  0x4c   :  { %1458 = vmatpush1.bf16.msra.mxu1 %v5123_v13  ;;  %1377 = vmatprep.subr.bf16.mxu0 %v5135_v17  ;;  %v5219_v13 = vld [vmem:[%s7644_s2 + $0x10c] ss:$16 sps:$4 sm:$0xff]  }
  0x4d   :  { %1459 = vmatprep.subr.bf16.mxu1 %v5132_v16  ;;  %1489 = vmatprep.mubr.bf16.mxu1 %v6103_v49  ;;  %v5180_v49 = vld [vmem:[%s7644_s2 + $0x1cc] ss:$16 sps:$4 sm:$0xff]   ;;  %v5220_v16 = vld [vmem:[%s7644_s2 + $0x2c8] ss:$16 sps:$4 sm:$0xff]  }
  0x4e   :  { %v5225_v17 = vld [vmem:[%s7644_s2 + $0x4ec] ss:$16 sps:$4 sm:$0xff]  }
  0x4f   :  { %1378 = vmatpush1.bf16.msra.mxu0 %v5133_v19  ;;  %v5223_v19 = vld [vmem:[%s7644_s2 + $0x4e8] ss:$16 sps:$4 sm:$0xff]  }
  0x50   :  { %1460 = vmatpush1.bf16.msra.mxu1 %v5130_v18  ;;  %1379 = vmatprep.subr.bf16.mxu0 %v5141_v21  ;;  %v5228_v18 = vld [vmem:[%s7644_s2 + $0x2ac] ss:$16 sps:$4 sm:$0xff]  }
  0x51   :  { %1461 = vmatprep.subr.bf16.mxu1 %v5138_v20  ;;  %v5226_v20 = vld [vmem:[%s7644_s2 + $0x2a8] ss:$16 sps:$4 sm:$0xff]   ;;  %v5231_v21 = vld [vmem:[%s7644_s2 + $0x4cc] ss:$16 sps:$4 sm:$0xff]  }
  0x53   :  { %1380 = vmatpush1.bf16.msra.mxu0 %v5139_v23  ;;  %v5232_v23 = vld [vmem:[%s7644_s2 + $0x288] ss:$16 sps:$4 sm:$0xff]  }
  0x54   :  { %1462 = vmatpush1.bf16.msra.mxu1 %v5136_v22  ;;  %1381 = vmatprep.subr.bf16.mxu0 %v5147_v25  ;;  %v5234_v22 = vld [vmem:[%s7644_s2 + $0x28c] ss:$16 sps:$4 sm:$0xff]  }
  0x55   :  { %1463 = vmatprep.subr.bf16.mxu1 %v5144_v24  ;;  %v5237_v24 = vld [vmem:[%s7644_s2 + $0x4ac] ss:$16 sps:$4 sm:$0xff]  }
  0x56   :  { %v5240_v25 = vld [vmem:[%s7644_s2 + $0x26c] ss:$16 sps:$4 sm:$0xff]  }
  0x57   :  { %1382 = vmatpush1.bf16.msra.mxu0 %v5145_v27  ;;  %v5243_v27 = vld [vmem:[%s7644_s2 + $0x48c] ss:$16 sps:$4 sm:$0xff]  }
  0x58   :  { %1464 = vmatpush1.bf16.msra.mxu1 %v5142_v26  ;;  %1383 = vmatprep.subr.bf16.mxu0 %v5153_v29  ;;  %v5235_v26 = vld [vmem:[%s7644_s2 + $0x4a8] ss:$16 sps:$4 sm:$0xff]  }
  0x59   :  { %1465 = vmatprep.subr.bf16.mxu1 %v5150_v28  ;;  %v5246_v28 = vld [vmem:[%s7644_s2 + $0x24c] ss:$16 sps:$4 sm:$0xff]   ;;  %v5241_v29 = vld [vmem:[%s7644_s2 + $0x488] ss:$16 sps:$4 sm:$0xff]  }
  0x5b   :  { %1384 = vmatpush1.bf16.msra.mxu0 %v5151_v31  ;;  %v5249_v31 = vld [vmem:[%s7644_s2 + $0x46c] ss:$16 sps:$4 sm:$0xff]  }
  0x5c   :  { %1466 = vmatpush1.bf16.msra.mxu1 %v5148_v30  ;;  %1385 = vmatprep.subr.bf16.mxu0 %v5159_v34  ;;  %v5244_v30 = vld [vmem:[%s7644_s2 + $0x248] ss:$16 sps:$4 sm:$0xff]  }
  0x5d   :  { %1467 = vmatprep.subr.bf16.mxu1 %v5156_v32  ;;  %v5252_v32 = vld [vmem:[%s7644_s2 + $0x22c] ss:$16 sps:$4 sm:$0xff]   ;;  %v5250_v34 = vld [vmem:[%s7644_s2 + $0x228] ss:$16 sps:$4 sm:$0xff]  }
  0x5f   :  { %1386 = vmatpush1.bf16.msra.mxu0 %v5157_v36  ;;  %v5258_v36 = vld [vmem:[%s7644_s2 + $0x20c] ss:$16 sps:$4 sm:$0xff]  }
  0x60   :  { %1468 = vmatpush1.bf16.msra.mxu1 %v5154_v35  ;;  %1387 = vmatprep.subr.bf16.mxu0 %v5165_v38  ;;  %v5255_v35 = vld [vmem:[%s7644_s2 + $0x44c] ss:$16 sps:$4 sm:$0xff]   ;;  %v5256_v38 = vld [vmem:[%s7644_s2 + $0x208] ss:$16 sps:$4 sm:$0xff]  }
  0x61   :  { %1469 = vmatprep.subr.bf16.mxu1 %v5162_v37  ;;  %v5253_v37 = vld [vmem:[%s7644_s2 + $0x448] ss:$16 sps:$4 sm:$0xff]  }
  0x63   :  { %1388 = vmatpush2.bf16.msra.mxu0 %v5163_v40  ;;  %v5264_v40 = vld [vmem:[%s7644_s2 + $0x3ec] ss:$16 sps:$4 sm:$0xff]  }
  0x64   :  { %1470 = vmatpush1.bf16.msra.mxu1 %v5160_v39  ;;  %1389 = vmatprep.subr.bf16.mxu0 %v5171_v42  ;;  %v5261_v39 = vld [vmem:[%s7644_s2 + $0x42c] ss:$16 sps:$4 sm:$0xff]   ;;  %v5262_v42 = vld [vmem:[%s7644_s2 + $0x3e8] ss:$16 sps:$4 sm:$0xff]  }
  0x65   :  { %1471 = vmatprep.subr.bf16.mxu1 %v5168_v41  ;;  %v5259_v41 = vld [vmem:[%s7644_s2 + $0x428] ss:$16 sps:$4 sm:$0xff]  }
  0x67   :  { %1390 = vmatpush2.bf16.msra.mxu0 %v5169_v44  ;;  %v5270_v44 = vld [vmem:[%s7644_s2 + $0x3cc] ss:$16 sps:$4 sm:$0xff]  }
  0x68   :  { %1472 = vmatpush1.bf16.msra.mxu1 %v5166_v43  ;;  %1391 = vmatprep.subr.bf16.mxu0 %v5177_v46  ;;  %v5267_v43 = vld [vmem:[%s7644_s2 + $0x40c] ss:$16 sps:$4 sm:$0xff]   ;;  %v5268_v46 = vld [vmem:[%s7644_s2 + $0x3c8] ss:$16 sps:$4 sm:$0xff]  }
  0x69   :  { %1473 = vmatprep.subr.bf16.mxu1 %v5174_v45  ;;  %v5265_v45 = vld [vmem:[%s7644_s2 + $0x408] ss:$16 sps:$4 sm:$0xff]  }
  0x6b   :  { %1392 = vmatpush2.bf16.msra.mxu0 %v5175_v48  ;;  %v5276_v48 = vld [vmem:[%s7644_s2 + $0x3ac] ss:$16 sps:$4 sm:$0xff]  }
  0x6c   :  { %1474 = vmatpush2.bf16.msra.mxu1 %v5172_v47  ;;  %1393 = vmatprep.subr.bf16.mxu0 %v5183_v50  ;;  %v5273_v47 = vld [vmem:[%s7644_s2 + $0x5ec] ss:$16 sps:$4 sm:$0xff]   ;;  %v5274_v50 = vld [vmem:[%s7644_s2 + $0x3a8] ss:$16 sps:$4 sm:$0xff]  }
  0x6d   :  { %1475 = vmatprep.subr.bf16.mxu1 %v5180_v49  ;;  %v5271_v49 = vld [vmem:[%s7644_s2 + $0x5e8] ss:$16 sps:$4 sm:$0xff]  }
  0x6f   :  { %1394 = vmatpush2.bf16.msra.mxu0 %v5181_v53  ;;  %v5282_v53 = vld [vmem:[%s7644_s2 + $0x38c] ss:$16 sps:$4 sm:$0xff]  }
  0x70   :  { %1476 = vmatpush2.bf16.msra.mxu1 %v5178_v52  ;;  %1395 = vmatprep.subr.bf16.mxu0 %v5189_v55  ;;  %v5279_v52 = vld [vmem:[%s7644_s2 + $0x5cc] ss:$16 sps:$4 sm:$0xff]   ;;  %v5280_v55 = vld [vmem:[%s7644_s2 + $0x388] ss:$16 sps:$4 sm:$0xff]  }
  0x71   :  { %1477 = vmatprep.subr.bf16.mxu1 %v5186_v54  ;;  %v5277_v54 = vld [vmem:[%s7644_s2 + $0x5c8] ss:$16 sps:$4 sm:$0xff]  }
  0x73   :  { %1396 = vmatpush2.bf16.msra.mxu0 %v5187_v57  ;;  %v5288_v57 = vld [vmem:[%s7644_s2 + $0x36c] ss:$16 sps:$4 sm:$0xff]  }
  0x74   :  { %1478 = vmatpush2.bf16.msra.mxu1 %v5184_v56  ;;  %1397 = vmatprep.subr.bf16.mxu0 %v5195_v59  ;;  %v5285_v56 = vld [vmem:[%s7644_s2 + $0x5ac] ss:$16 sps:$4 sm:$0xff]   ;;  %v5286_v59 = vld [vmem:[%s7644_s2 + $0x368] ss:$16 sps:$4 sm:$0xff]  }
  0x75   :  { %1479 = vmatprep.subr.bf16.mxu1 %v5192_v58  ;;  %v5283_v58 = vld [vmem:[%s7644_s2 + $0x5a8] ss:$16 sps:$4 sm:$0xff]  }
  0x77   :  { %1398 = vmatpush2.bf16.msra.mxu0 %v5193_v61  ;;  %v5294_v61 = vld [vmem:[%s7644_s2 + $0x34c] ss:$16 sps:$4 sm:$0xff]  }
  0x78   :  { %1480 = vmatpush2.bf16.msra.mxu1 %v5190_v60  ;;  %1399 = vmatprep.subr.bf16.mxu0 %v5201_v63  ;;  %v5291_v60 = vld [vmem:[%s7644_s2 + $0x58c] ss:$16 sps:$4 sm:$0xff]   ;;  %v5292_v63 = vld [vmem:[%s7644_s2 + $0x348] ss:$16 sps:$4 sm:$0xff]  }
  0x79   :  { %1481 = vmatprep.subr.bf16.mxu1 %v5198_v62  ;;  %v5289_v62 = vld [vmem:[%s7644_s2 + $0x588] ss:$16 sps:$4 sm:$0xff]  }
  0x7b   :  { %1400 = vmatpush2.bf16.msra.mxu0 %v5199_v1  ;;  %v5300_v1 = vld [vmem:[%s7644_s2 + $0x32c] ss:$16 sps:$4 sm:$0xff]  }
  0x7c   :  { %1482 = vmatpush2.bf16.msra.mxu1 %v5196_v0  ;;  %1401 = vmatprep.subr.bf16.mxu0 %v5207_v3  ;;  %v5297_v0 = vld [vmem:[%s7644_s2 + $0x56c] ss:$16 sps:$4 sm:$0xff]   ;;  %v5298_v3 = vld [vmem:[%s7644_s2 + $0x328] ss:$16 sps:$4 sm:$0xff]  }
  0x7d   :  { %1483 = vmatprep.subr.bf16.mxu1 %v5204_v2  ;;  %v5295_v2 = vld [vmem:[%s7644_s2 + $0x568] ss:$16 sps:$4 sm:$0xff]  }
  0x7f   :  { %1402 = vmatpush2.bf16.msra.mxu0 %v5205_v6  ;;  %v5306_v6 = vld [vmem:[%s7644_s2 + $0x30c] ss:$16 sps:$4 sm:$0xff]  }
  0x80   :  { %1484 = vmatpush2.bf16.msra.mxu1 %v5202_v5  ;;  %1500 = vmatprep.subr.bf16.mxu0 %v5216_v8  ;;  %v5303_v5 = vld [vmem:[%s7644_s2 + $0x54c] ss:$16 sps:$4 sm:$0xff]   ;;  %v5304_v8 = vld [vmem:[%s7644_s2 + $0x308] ss:$16 sps:$4 sm:$0xff]  }
  0x81   :  { %1485 = vmatprep.subr.bf16.mxu1 %v5213_v7  ;;  %v5301_v7 = vld [vmem:[%s7644_s2 + $0x548] ss:$16 sps:$4 sm:$0xff]  }
  0x82   :  { %1404 = vmatmul.mubr.bf16.vlgmr.msra.gmra.mxu0 %v6373_v9 }
  0x83   :  { %1501 = vmatpush1.bf16.msra.mxu0 %v5214_v12  ;;  %1532 = vmatprep.mubr.bf16.mxu0 %v6111_v51  ;;  %v5229_v51 = vld [vmem:[%s7644_s2 + $0x4c8] ss:$16 sps:$4 sm:$0xff]   ;;  %v5312_v12 = vld [vmem:[%s7644_s2 + $0x60c] ss:$16 sps:$4 sm:$0xff]  }
  0x84   :  { %1486 = vmatpush2.bf16.msra.mxu1 %v5211_v10  ;;  %1502 = vmatprep.subr.bf16.mxu0 %v5222_v14  ;;  %v5309_v10 = vld [vmem:[%s7644_s2 + $0x52c] ss:$16 sps:$4 sm:$0xff]   ;;  %v5310_v14 = vld [vmem:[%s7644_s2 + $0x608] ss:$16 sps:$4 sm:$0xff]  }
  0x85   :  { %1487 = vmatprep.subr.bf16.mxu1 %v5219_v13  ;;  %v5307_v13 = vld [vmem:[%s7644_s2 + $0x528] ss:$16 sps:$4 sm:$0xff]  }
  0x87   :  { %1503 = vmatpush1.bf16.msra.mxu0 %v5220_v16  ;;  %v5318_v16 = vld [vmem:[%s7646_s4 + $0x74] ss:$8 sps:$4 sm:$0xff]  }
  0x88   :  { %1488 = vmatpush2.bf16.msra.mxu1 %v5217_v15  ;;  %1504 = vmatprep.subr.bf16.mxu0 %v5228_v18  ;;  %v5315_v15 = vld [vmem:[%s7644_s2 + $0x50c] ss:$16 sps:$4 sm:$0xff]   ;;  %v5313_v18 = vld [vmem:[%s7644_s2 + $0x508] ss:$16 sps:$4 sm:$0xff]  }
  0x89   :  { %1543 = vmatprep.subr.bf16.mxu1 %v5225_v17  ;;  %v5840_v17 = vld [vmem:[%s7642_s0 + $0x8] ss:$28 sps:$4 sm:$0xff]  }
  0x8b   :  { %1490 = vmatmul.mubr.bf16.vlgmr.msra.gmra.mxu1 %v6166_v4  ;;  %1505 = vmatpush1.bf16.msra.mxu0 %v5226_v20  ;;  %v5238_v4 = vld [vmem:[%s7644_s2 + $0x268] ss:$16 sps:$4 sm:$0xff]   ;;  %v5321_v20 = vld [vmem:[%s7646_s4 + $0x64] ss:$8 sps:$4 sm:$0xff]  }
  0x8c   :  { %1544 = vmatpush1.bf16.msra.mxu1 %v5223_v19  ;;  %1506 = vmatprep.subr.bf16.mxu0 %v5234_v22  ;;  %v5316_v19 = vld [vmem:[%s7646_s4 + $0x70] ss:$8 sps:$4 sm:$0xff]  }
  0x8d   :  { %1545 = vmatprep.subr.bf16.mxu1 %v5231_v21  ;;  %1575 = vmatprep.mubr.bf16.mxu1 %v6256_v33  ;;  %v5247_v33 = vld [vmem:[%s7644_s2 + $0x468] ss:$16 sps:$4 sm:$0xff]  }
  0x8e   :  { %v5319_v21 = vld [vmem:[%s7646_s4 + $0x60] ss:$8 sps:$4 sm:$0xff]   ;;  %v5841_v22 = vld [vmem:[%s7642_s0 + $0x18] ss:$28 sps:$4 sm:$0xff]  }
  0x8f   :  { %1507 = vmatpush1.bf16.msra.mxu0 %v5232_v23  ;;  %v5322_v23 = vld [vmem:[%s7646_s4 + $0x50] ss:$8 sps:$4 sm:$0xff]  }
  0x90   :  { %1546 = vmatpush1.bf16.msra.mxu1 %v5229_v51  ;;  %1508 = vmatprep.subr.bf16.mxu0 %v5240_v25  ;;  %v5324_v51 = vld [vmem:[%s7646_s4 + $0x54] ss:$8 sps:$4 sm:$0xff]  }
  0x91   :  { %1547 = vmatprep.subr.bf16.mxu1 %v5237_v24  ;;  %v5364_v24 = vld [vmem:[%s7646_s4 + $0x170] ss:$8 sps:$4 sm:$0xff]   ;;  %v5366_v25 = vld [vmem:[%s7646_s4 + $0x174] ss:$8 sps:$4 sm:$0xff]  }
  0x93   :  { %1509 = vmatpush1.bf16.msra.mxu0 %v5238_v4  ;;  %v5369_v4 = vld [vmem:[%s7646_s4 + $0x164] ss:$8 sps:$4 sm:$0xff]  }
  0x94   :  { %1548 = vmatpush1.bf16.msra.mxu1 %v5235_v26  ;;  %1510 = vmatprep.subr.bf16.mxu0 %v5246_v28  ;;  %v5325_v26 = vld [vmem:[%s7646_s4 + $0x40] ss:$8 sps:$4 sm:$0xff]  }
  0x95   :  { %1549 = vmatprep.subr.bf16.mxu1 %v5243_v27  ;;  %v5330_v27 = vld [vmem:[%s7646_s4 + $0x34] ss:$8 sps:$4 sm:$0xff]   ;;  %v5367_v28 = vld [vmem:[%s7646_s4 + $0x160] ss:$8 sps:$4 sm:$0xff]  }
  0x97   :  { %1511 = vmatpush1.bf16.msra.mxu0 %v5244_v30  ;;  %v5328_v30 = vld [vmem:[%s7646_s4 + $0x30] ss:$8 sps:$4 sm:$0xff]  }
  0x98   :  { %1550 = vmatpush1.bf16.msra.mxu1 %v5241_v29  ;;  %1512 = vmatprep.subr.bf16.mxu0 %v5252_v32  ;;  %v5372_v29 = vld [vmem:[%s7646_s4 + $0x154] ss:$8 sps:$4 sm:$0xff]   ;;  %v5370_v32 = vld [vmem:[%s7646_s4 + $0x150] ss:$8 sps:$4 sm:$0xff]  }
  0x99   :  { %1551 = vmatprep.subr.bf16.mxu1 %v5249_v31  ;;  %v5333_v31 = vld [vmem:[%s7646_s4 + $0x24] ss:$8 sps:$4 sm:$0xff]  }
  0x9b   :  { %1513 = vmatpush1.bf16.msra.mxu0 %v5250_v34  ;;  %v5375_v34 = vld [vmem:[%s7646_s4 + $0x144] ss:$8 sps:$4 sm:$0xff]  }
  0x9c   :  { %1552 = vmatpush1.bf16.msra.mxu1 %v5247_v33  ;;  %1514 = vmatprep.subr.bf16.mxu0 %v5258_v36  ;;  %v5331_v33 = vld [vmem:[%s7646_s4 + $0x20] ss:$8 sps:$4 sm:$0xff]  }
  0x9d   :  { %1553 = vmatprep.subr.bf16.mxu1 %v5255_v35  ;;  %v5336_v35 = vld [vmem:[%s7646_s4 + $0x14] ss:$8 sps:$4 sm:$0xff]   ;;  %v5373_v36 = vld [vmem:[%s7646_s4 + $0x140] ss:$8 sps:$4 sm:$0xff]  }
  0x9f   :  { %1515 = vmatpush1.bf16.msra.mxu0 %v5256_v38  ;;  %v5334_v38 = vld [vmem:[%s7646_s4 + $0x10] ss:$8 sps:$4 sm:$0xff]  }
  0xa0   :  { %1554 = vmatpush1.bf16.msra.mxu1 %v5253_v37  ;;  %1516 = vmatprep.subr.bf16.mxu0 %v5264_v40  ;;  %v5378_v37 = vld [vmem:[%s7646_s4 + $0x134] ss:$8 sps:$4 sm:$0xff]   ;;  %v5376_v40 = vld [vmem:[%s7646_s4 + $0x130] ss:$8 sps:$4 sm:$0xff]  }
  0xa1   :  { %1555 = vmatprep.subr.bf16.mxu1 %v5261_v39  ;;  %v5339_v39 = vld [vmem:[%s7646_s4 + $0x4] ss:$8 sps:$4 sm:$0xff]  }
  0xa3   :  { %1517 = vmatpush2.bf16.msra.mxu0 %v5262_v42  ;;  %v5337_v42 = vld [vmem:[%s7646_s4] ss:$8 sps:$4 sm:$0xff]  }
  0xa4   :  { %1556 = vmatpush1.bf16.msra.mxu1 %v5259_v41  ;;  %1518 = vmatprep.subr.bf16.mxu0 %v5270_v44  ;;  %v5381_v41 = vld [vmem:[%s7646_s4 + $0x124] ss:$8 sps:$4 sm:$0xff]   ;;  %v5379_v44 = vld [vmem:[%s7646_s4 + $0x120] ss:$8 sps:$4 sm:$0xff]  }
  0xa5   :  { %1557 = vmatprep.subr.bf16.mxu1 %v5267_v43  ;;  %v5342_v43 = vld [vmem:[%s7646_s4 + $0xf4] ss:$8 sps:$4 sm:$0xff]  }
  0xa7   :  { %1519 = vmatpush2.bf16.msra.mxu0 %v5268_v46  ;;  %v5340_v46 = vld [vmem:[%s7646_s4 + $0xf0] ss:$8 sps:$4 sm:$0xff]  }
  0xa8   :  { %1558 = vmatpush1.bf16.msra.mxu1 %v5265_v45  ;;  %1520 = vmatprep.subr.bf16.mxu0 %v5276_v48  ;;  %v5384_v45 = vld [vmem:[%s7646_s4 + $0x114] ss:$8 sps:$4 sm:$0xff]   ;;  %v5382_v48 = vld [vmem:[%s7646_s4 + $0x110] ss:$8 sps:$4 sm:$0xff]  }
  0xa9   :  { %1559 = vmatprep.subr.bf16.mxu1 %v5273_v47  ;;  %v5345_v47 = vld [vmem:[%s7646_s4 + $0xe4] ss:$8 sps:$4 sm:$0xff]  }
  0xab   :  { %1521 = vmatpush2.bf16.msra.mxu0 %v5274_v50  ;;  %v5343_v50 = vld [vmem:[%s7646_s4 + $0xe0] ss:$8 sps:$4 sm:$0xff]  }
  0xac   :  { %1560 = vmatpush2.bf16.msra.mxu1 %v5271_v49  ;;  %1522 = vmatprep.subr.bf16.mxu0 %v5282_v53  ;;  %v5387_v49 = vld [vmem:[%s7646_s4 + $0x104] ss:$8 sps:$4 sm:$0xff]   ;;  %v5385_v53 = vld [vmem:[%s7646_s4 + $0x100] ss:$8 sps:$4 sm:$0xff]  }
  0xad   :  { %1561 = vmatprep.subr.bf16.mxu1 %v5279_v52  ;;  %v5348_v52 = vld [vmem:[%s7646_s4 + $0xd4] ss:$8 sps:$4 sm:$0xff]  }
  0xaf   :  { %1523 = vmatpush2.bf16.msra.mxu0 %v5280_v55  ;;  %v5346_v55 = vld [vmem:[%s7646_s4 + $0xd0] ss:$8 sps:$4 sm:$0xff]  }
  0xb0   :  { %1562 = vmatpush2.bf16.msra.mxu1 %v5277_v54  ;;  %1524 = vmatprep.subr.bf16.mxu0 %v5288_v57  ;;  %v5390_v54 = vld [vmem:[%s7646_s4 + $0x1f4] ss:$8 sps:$4 sm:$0xff]   ;;  %v5388_v57 = vld [vmem:[%s7646_s4 + $0x1f0] ss:$8 sps:$4 sm:$0xff]  }
  0xb1   :  { %1563 = vmatprep.subr.bf16.mxu1 %v5285_v56  ;;  %v5351_v56 = vld [vmem:[%s7646_s4 + $0xc4] ss:$8 sps:$4 sm:$0xff]  }
  0xb3   :  { %1525 = vmatpush2.bf16.msra.mxu0 %v5286_v59  ;;  %v5349_v59 = vld [vmem:[%s7646_s4 + $0xc0] ss:$8 sps:$4 sm:$0xff]  }
  0xb4   :  { %1564 = vmatpush2.bf16.msra.mxu1 %v5283_v58  ;;  %1526 = vmatprep.subr.bf16.mxu0 %v5294_v61  ;;  %v5393_v58 = vld [vmem:[%s7646_s4 + $0x1e4] ss:$8 sps:$4 sm:$0xff]   ;;  %v5391_v61 = vld [vmem:[%s7646_s4 + $0x1e0] ss:$8 sps:$4 sm:$0xff]  }
  0xb5   :  { %1565 = vmatprep.subr.bf16.mxu1 %v5291_v60  ;;  %v5354_v60 = vld [vmem:[%s7646_s4 + $0xb4] ss:$8 sps:$4 sm:$0xff]  }
  0xb7   :  { %1527 = vmatpush2.bf16.msra.mxu0 %v5292_v63  ;;  %v5352_v63 = vld [vmem:[%s7646_s4 + $0xb0] ss:$8 sps:$4 sm:$0xff]  }
  0xb8   :  { %1566 = vmatpush2.bf16.msra.mxu1 %v5289_v62  ;;  %1528 = vmatprep.subr.bf16.mxu0 %v5300_v1  ;;  %v5396_v62 = vld [vmem:[%s7646_s4 + $0x1d4] ss:$8 sps:$4 sm:$0xff]   ;;  %v5394_v1 = vld [vmem:[%s7646_s4 + $0x1d0] ss:$8 sps:$4 sm:$0xff]  }
  0xb9   :  { %1567 = vmatprep.subr.bf16.mxu1 %v5297_v0  ;;  %v5357_v0 = vld [vmem:[%s7646_s4 + $0xa4] ss:$8 sps:$4 sm:$0xff]  }
  0xbb   :  { %1529 = vmatpush2.bf16.msra.mxu0 %v5298_v3  ;;  %v5360_v3 = vld [vmem:[%s7646_s4 + $0x94] ss:$8 sps:$4 sm:$0xff]  }
  0xbc   :  { %1568 = vmatpush2.bf16.msra.mxu1 %v5295_v2  ;;  %1530 = vmatprep.subr.bf16.mxu0 %v5306_v6  ;;  %v5355_v2 = vld [vmem:[%s7646_s4 + $0xa0] ss:$8 sps:$4 sm:$0xff]   ;;  %v5363_v6 = vld [vmem:[%s7646_s4 + $0x84] ss:$8 sps:$4 sm:$0xff]  }
  0xbd   :  { %1569 = vmatprep.subr.bf16.mxu1 %v5303_v5  ;;  %v5358_v5 = vld [vmem:[%s7646_s4 + $0x90] ss:$8 sps:$4 sm:$0xff]  }
  0xbf   :  { %1531 = vmatpush2.bf16.msra.mxu0 %v5304_v8  ;;  %v5399_v8 = vld [vmem:[%s7646_s4 + $0x1c4] ss:$8 sps:$4 sm:$0xff]  }
  0xc0   :  { %1570 = vmatpush2.bf16.msra.mxu1 %v5301_v7  ;;  %1600 = vmatprep.subr.bf16.mxu0 %v5312_v12  ;;  %v5361_v7 = vld [vmem:[%s7646_s4 + $0x80] ss:$8 sps:$4 sm:$0xff]   ;;  %v5402_v12 = vld [vmem:[%s7646_s4 + $0x1b4] ss:$8 sps:$4 sm:$0xff]  }
  0xc1   :  { %1571 = vmatprep.subr.bf16.mxu1 %v5309_v10  ;;  %v5397_v10 = vld [vmem:[%s7646_s4 + $0x1c0] ss:$8 sps:$4 sm:$0xff]  }
  0xc2   :  { %1533 = vmatmul.mubr.bf16.vlgmr.msra.gmra.mxu0 %v5840_v17 }
  0xc3   :  { %1601 = vmatpush1.bf16.msra.mxu0 %v5310_v14  ;;  %1618 = vmatprep.mubr.bf16.mxu0 %v5886_v11  ;;  %v5405_v14 = vld [vmem:[%s7646_s4 + $0x1a4] ss:$8 sps:$4 sm:$0xff]  }
  0xc4   :  { %1572 = vmatpush2.bf16.msra.mxu1 %v5307_v13  ;;  %2037 = vmatprep.subr.bf16.mxu0 %v5318_v16  ;;  %v5400_v13 = vld [vmem:[%s7646_s4 + $0x1b0] ss:$8 sps:$4 sm:$0xff]   ;;  %v5408_v16 = vld [vmem:[%s7646_s4 + $0x194] ss:$8 sps:$4 sm:$0xff]  }
  0xc5   :  { %1573 = vmatprep.subr.bf16.mxu1 %v5315_v15  ;;  %v5403_v15 = vld [vmem:[%s7646_s4 + $0x1a0] ss:$8 sps:$4 sm:$0xff]  }
  0xc8   :  { %1574 = vmatpush2.bf16.msra.mxu1 %v5313_v18 }
  0xc9   :  { %2080 = vmatprep.subr.bf16.mxu1 %v5366_v25 }
  0xca   :  { %4610 = vmatmul.mubr.msk.bf16.vlgmr.msra.gmra.mxu0 %vm1281_vm0, %v5841_v22 }
  0xcb   :  { %1576 = vmatmul.mubr.bf16.vlgmr.msra.gmra.mxu1 %v6373_v9  ;;  %2038 = vmatpush1.bf16.msra.mxu0 %v5316_v19  ;;  %v5327_v9 = vld [vmem:[%s7646_s4 + $0x44] ss:$8 sps:$4 sm:$0xff]  }
  0xcc   :  { %2039 = vmatprep.subr.bf16.mxu0 %v5321_v20  ;;  %2081 = vmatpush1.bf16.msra.mxu1 %v5364_v24 }
  0xcd   :  { %2082 = vmatprep.subr.bf16.mxu1 %v5369_v4 }
  0xcf   :  { %2040 = vmatpush1.bf16.msra.mxu0 %v5319_v21 }
  0xd0   :  { %2041 = vmatprep.subr.bf16.mxu0 %v5324_v51  ;;  %2083 = vmatpush1.bf16.msra.mxu1 %v5367_v28 }
  0xd1   :  { %2084 = vmatprep.subr.bf16.mxu1 %v5372_v29 }
  0xd3   :  { %2042 = vmatpush1.bf16.msra.mxu0 %v5322_v23 }
  0xd4   :  { %2043 = vmatprep.subr.bf16.mxu0 %v5327_v9  ;;  %2085 = vmatpush1.bf16.msra.mxu1 %v5370_v32 }
  0xd5   :  { %2086 = vmatprep.subr.bf16.mxu1 %v5375_v34 }
  0xd7   :  { %2044 = vmatpush1.bf16.msra.mxu0 %v5325_v26 }
  0xd8   :  { %2045 = vmatprep.subr.bf16.mxu0 %v5330_v27  ;;  %2087 = vmatpush1.bf16.msra.mxu1 %v5373_v36 }
  0xd9   :  { %2088 = vmatprep.subr.bf16.mxu1 %v5378_v37 }
  0xdb   :  { %2046 = vmatpush1.bf16.msra.mxu0 %v5328_v30 }
  0xdc   :  { %2047 = vmatprep.subr.bf16.mxu0 %v5333_v31  ;;  %2089 = vmatpush1.bf16.msra.mxu1 %v5376_v40 }
  0xdd   :  { %2090 = vmatprep.subr.bf16.mxu1 %v5381_v41 }
  0xdf   :  { %2048 = vmatpush1.bf16.msra.mxu0 %v5331_v33 }
  0xe0   :  { %2049 = vmatprep.subr.bf16.mxu0 %v5336_v35  ;;  %2091 = vmatpush1.bf16.msra.mxu1 %v5379_v44 }
  0xe1   :  { %2092 = vmatprep.subr.bf16.mxu1 %v5384_v45 }
  0xe3   :  { %2050 = vmatpush1.bf16.msra.mxu0 %v5334_v38 }
  0xe4   :  { %2051 = vmatprep.subr.bf16.mxu0 %v5339_v39  ;;  %2093 = vmatpush1.bf16.msra.mxu1 %v5382_v48 }
  0xe5   :  { %2094 = vmatprep.subr.bf16.mxu1 %v5387_v49 }
  0xe7   :  { %2052 = vmatpush1.bf16.msra.mxu0 %v5337_v42 }
  0xe8   :  { %2053 = vmatprep.subr.bf16.mxu0 %v5342_v43  ;;  %2095 = vmatpush1.bf16.msra.mxu1 %v5385_v53 }
  0xe9   :  { %2096 = vmatprep.subr.bf16.mxu1 %v5390_v54 }
  0xeb   :  { %2054 = vmatpush2.bf16.msra.mxu0 %v5340_v46 }
  0xec   :  { %2055 = vmatprep.subr.bf16.mxu0 %v5345_v47  ;;  %2097 = vmatpush2.bf16.msra.mxu1 %v5388_v57 }
  0xed   :  { %2098 = vmatprep.subr.bf16.mxu1 %v5393_v58 }
  0xef   :  { %2056 = vmatpush2.bf16.msra.mxu0 %v5343_v50 }
  0xf0   :  { %2057 = vmatprep.subr.bf16.mxu0 %v5348_v52  ;;  %2099 = vmatpush2.bf16.msra.mxu1 %v5391_v61 }
  0xf1   :  { %2100 = vmatprep.subr.bf16.mxu1 %v5396_v62 }
  0xf3   :  { %2058 = vmatpush2.bf16.msra.mxu0 %v5346_v55 }
  0xf4   :  { %2059 = vmatprep.subr.bf16.mxu0 %v5351_v56  ;;  %2101 = vmatpush2.bf16.msra.mxu1 %v5394_v1 }
  0xf5   :  { %2102 = vmatprep.subr.bf16.mxu1 %v5399_v8 }
  0xf7   :  { %2060 = vmatpush2.bf16.msra.mxu0 %v5349_v59 }
  0xf8   :  { %2061 = vmatprep.subr.bf16.mxu0 %v5354_v60  ;;  %2103 = vmatpush2.bf16.msra.mxu1 %v5397_v10 }
  0xf9   :  { %2104 = vmatprep.subr.bf16.mxu1 %v5402_v12 }
  0xfb   :  { %2062 = vmatpush2.bf16.msra.mxu0 %v5352_v63 }
  0xfc   :  { %2063 = vmatprep.subr.bf16.mxu0 %v5357_v0  ;;  %2105 = vmatpush2.bf16.msra.mxu1 %v5400_v13 }
  0xfd   :  { %2106 = vmatprep.subr.bf16.mxu1 %v5405_v14 }
  0xff   :  { %2064 = vmatpush2.bf16.msra.mxu0 %v5355_v2 }
 0x100   :  { %2065 = vmatprep.subr.bf16.mxu0 %v5360_v3  ;;  %2107 = vmatpush2.bf16.msra.mxu1 %v5403_v15 }
 0x103   :  { %2066 = vmatpush2.bf16.msra.mxu0 %v5358_v5 }
 0x104   :  { %2067 = vmatprep.subr.bf16.mxu0 %v5363_v6 }
 0x107   :  { %2068 = vmatpush2.bf16.msra.mxu0 %v5361_v7 }
 0x108   :  { %18 = vsyncpa [#allocation5], 0  ;;  %v5406_v17 = vld [vmem:[%s7646_s4 + $0x190] ss:$8 sps:$4 sm:$0xff]   ;;  %2108 = vmatprep.subr.bf16.mxu1 %v5408_v16  ;;  %v5411_v18 = vld [vmem:[%s7646_s4 + $0x184] ss:$8 sps:$4 sm:$0xff]   ;;  %v1362_v20 = vpop.f32.mrf.mxu1  ;;  %v246_v21 = vlaneseq  ;;  %v1319_v23 = vpop.f32.mrf.mxu0 }
 0x109   :  { %2109 = vmatpush2.bf16.msra.mxu1 %v5406_v17  ;;  %v5409_v19 = vld [vmem:[%s7646_s4 + $0x180] ss:$8 sps:$4 sm:$0xff]  }
 0x10a   :  { %2110 = vmatprep.subr.bf16.mxu1 %v5411_v18  ;;  %v1364_v22 = vpop.f32.mrf.mxu1  ;;  %v6784_v51 = vshrl.u32 %v246_v21, 7  ;;  %v1321_v26 = vpop.f32.mrf.mxu0  ;;  %v244_v4 = vld [vmem:[%s7645_s3] sm:$0xf] }
 0x10c   :  { %v1366_v9 = vpop.f32.mrf.mxu1  ;;  %v6787_v24 = vsub.s32 1, %v6784_v51  ;;  %v6790_v25 = vsub.s32 0, %v6784_v51  ;;  %v1323_v30 = vpop.f32.mrf.mxu0  ;;  %v6799_v1 = vsub.s32 3, %v6784_v51  ;;  %v6802_v2 = vsub.s32 2, %v6784_v51 }
 0x10d   :  { %2111 = vmatpush2.bf16.msra.mxu1 %v5409_v19 }
 0x10e   :  { %v1368_v27 = vpop.f32.mrf.mxu1  ;;  %v253_v28 = vrot.slane %v244_v4, %v6787_v24  ;;  %v249_v29 = vrot.slane %v244_v4, %v6790_v25  ;;  %v1325_v34 = vpop.f32.mrf.mxu0  ;;  %v261_v7 = vrot.slane %v244_v4, %v6799_v1  ;;  %v257_v8 = vrot.slane %v244_v4, %v6802_v2 }
 0x110   :  { %v1448_v31 = vpop.f32.mrf.mxu1  ;;  %v1322_v32 = vadd.f32 %v1321_v26, %v253_v28  ;;  %v1320_v33 = vadd.f32 %v1319_v23, %v249_v29  ;;  %v1324_v35 = vadd.f32 %v1323_v30, %v249_v29  ;;  %v1326_v39 = vadd.f32 %v1325_v34, %v253_v28 }
 0x112   :  { %v1450_v36 = vpop.f32.mrf.mxu1  ;;  %v1365_v38 = vadd.f32 %v1364_v22, %v1322_v32  ;;  %v1363_v40 = vadd.f32 %v1362_v20, %v1320_v33  ;;  %v1367_v42 = vadd.f32 %v1366_v9, %v1324_v35  ;;  %v1369_v47 = vadd.f32 %v1368_v27, %v1326_v39 }
 0x114   :  { %v1452_v44 = vpop.f32.mrf.mxu1 }
 0x116   :  { %v1454_v54 = vpop.f32.mrf.mxu1 }
 0x142   :  { %v1405_v37 = vpop.f32.mrf.mxu0 }
 0x143   :  { %v1406_v45 = vadd.f32 %v1405_v37, %v1363_v40 }
 0x144   :  { %v1407_v41 = vpop.f32.mrf.mxu0 }
 0x145   :  { %v1408_v43 = vadd.f32 %v1407_v41, %v1365_v38  ;;  %v1449_v55 = vadd.f32 %v1448_v31, %v1406_v45  ;;  %v5417_v45 = vld [vmem:[%s7648_s6 + $0xec] ss:$16 sps:$4 sm:$0xff]  }
 0x146   :  { %v1409_v46 = vpop.f32.mrf.mxu0  ;;  %2393 = vmatprep.subr.bf16.mxu1 %v5417_v45 }
 0x147   :  { %v1410_v48 = vadd.f32 %v1409_v46, %v1367_v42  ;;  %v1451_v50 = vadd.f32 %v1450_v36, %v1408_v43  ;;  %v1629_v60 = vmax.f32 %v1449_v55, 0.0  ;;  %v5412_v46 = vld [vmem:[%s7648_s6 + $0xe0] ss:$16 sps:$4 sm:$0xff]   ;;  %v5427_v55 = vld [vmem:[%s7648_s6 + $0xa8] ss:$16 sps:$4 sm:$0xff]  }
 0x148   :  { %v1411_v49 = vpop.f32.mrf.mxu0 }
 0x149   :  { %v1453_v52 = vadd.f32 %v1452_v44, %v1410_v48  ;;  %v1412_v53 = vadd.f32 %v1411_v49, %v1369_v47  ;;  %v1630_v58 = vmax.f32 %v1451_v50, 0.0  ;;  %v5414_v44 = vld [vmem:[%s7648_s6 + $0xe4] ss:$16 sps:$4 sm:$0xff]   ;;  %v5415_v47 = vld [vmem:[%s7648_s6 + $0xe8] ss:$16 sps:$4 sm:$0xff]  }
 0x14a   :  { %2350 = vmatprep.subr.bf16.mxu0 %v5414_v44  ;;  %v5423_v48 = vld [vmem:[%s7648_s6 + $0xcc] ss:$16 sps:$4 sm:$0xff]   ;;  %v5418_v49 = vld [vmem:[%s7648_s6 + $0xc0] ss:$16 sps:$4 sm:$0xff]   ;;  %v5421_v50 = vld [vmem:[%s7648_s6 + $0xc8] ss:$16 sps:$4 sm:$0xff]  }
 0x14b   :  { %v1455_v56 = vadd.f32 %v1454_v54, %v1412_v53  ;;  %v1633_v57 = vmax.f32 %v1453_v52, 0.0  ;;  %v1491_v63 = vpop.f32.mrf.mxu1  ;;  %v5426_v52 = vld [vmem:[%s7648_s6 + $0xa4] ss:$16 sps:$4 sm:$0xff]   ;;  %v5429_v53 = vld [vmem:[%s7648_s6 + $0xac] ss:$16 sps:$4 sm:$0xff]  }
 0x14c   :  { %v1492_v15 = vadd.f32 %v1491_v63, %v257_v8  ;;  %v5424_v54 = vld [vmem:[%s7648_s6 + $0xa0] ss:$16 sps:$4 sm:$0xff]   ;;  %v5441_v63 = vld [vmem:[%s7648_s6 + $0x6c] ss:$16 sps:$4 sm:$0xff]  }
 0x14d   :  { %v1634_v59 = vmax.f32 %v1455_v56, 0.0  ;;  %v1637_v62 = vpack.c.bf16 %v1633_v57, %v1629_v60  ;;  %v1493_v0 = vpop.f32.mrf.mxu1  ;;  %v5432_v56 = vld [vmem:[%s7648_s6 + $0x84] ss:$16 sps:$4 sm:$0xff]   ;;  %v5435_v57 = vld [vmem:[%s7648_s6 + $0x8c] ss:$16 sps:$4 sm:$0xff]  }
 0x14e   :  { %v1494_v14 = vadd.f32 %v1493_v0, %v261_v7  ;;  %v5438_v60 = vld [vmem:[%s7648_s6 + $0x64] ss:$16 sps:$4 sm:$0xff]   ;;  %v2124_v44 = vld [vmem:[%s7643_s1 + $0x8] sm:$0xff] }
 0x14f   :  { %v1638_v61 = vpack.c.bf16 %v1634_v59, %v1630_v58  ;;  %v1495_v5 = vpop.f32.mrf.mxu1  ;;  %v5430_v58 = vld [vmem:[%s7648_s6 + $0x80] ss:$16 sps:$4 sm:$0xff]   ;;  %v5433_v59 = vld [vmem:[%s7648_s6 + $0x88] ss:$16 sps:$4 sm:$0xff]   ;;  %v5444_v0 = vld [vmem:[%s7648_s6 + $0x44] ss:$16 sps:$4 sm:$0xff]  }
 0x150   :  { %v1496_v18 = vadd.f32 %v1495_v5, %v257_v8  ;;  %v5442_v5 = vld [vmem:[%s7648_s6 + $0x40] ss:$16 sps:$4 sm:$0xff]   ;;  %v5453_v8 = vld [vmem:[%s7648_s6 + $0x2c] ss:$16 sps:$4 sm:$0xff]  }
 0x151   :  { %2069 = vmatprep.mubr.bf16.mxu0 %v1638_v61  ;;  %v1497_v12 = vpop.f32.mrf.mxu1  ;;  %v5436_v61 = vld [vmem:[%s7648_s6 + $0x60] ss:$16 sps:$4 sm:$0xff]  }
 0x152   :  { %2070 = vmatmul.mubr.bf16.vlgmr.msra.gmra.mxu0 %v1637_v62  ;;  %v1498_v23 = vadd.f32 %v1497_v12, %v261_v7  ;;  %v5439_v62 = vld [vmem:[%s7648_s6 + $0x68] ss:$16 sps:$4 sm:$0xff]   ;;  %v5450_v7 = vld [vmem:[%s7648_s6 + $0x24] ss:$16 sps:$4 sm:$0xff]  }
 0x153   :  { %2382 = vmatprep.mubr.bf16.mxu0 %v5886_v11  ;;  %2351 = vmatpush1.bf16.msra.mxu0 %v5412_v46  ;;  %v5451_v12 = vld [vmem:[%s7648_s6 + $0x28] ss:$16 sps:$4 sm:$0xff]  }
 0x182   :  { %v1534_v3 = vpop.f32.mrf.mxu0 }
 0x183   :  { %v1535_v20 = vadd.f32 %v1534_v3, %v1492_v15  ;;  %v5447_v3 = vld [vmem:[%s7648_s6 + $0x4c] ss:$16 sps:$4 sm:$0xff]   ;;  %v5454_v15 = vld [vmem:[%s7648_s6] ss:$16 sps:$4 sm:$0xff]  }
 0x184   :  { %v1536_v6 = vpop.f32.mrf.mxu0 }
 0x185   :  { %v1537_v19 = vadd.f32 %v1536_v6, %v1494_v14  ;;  %v5445_v6 = vld [vmem:[%s7648_s6 + $0x48] ss:$16 sps:$4 sm:$0xff]   ;;  %v5459_v14 = vld [vmem:[%s7648_s6 + $0xc] ss:$16 sps:$4 sm:$0xff]  }
 0x186   :  { %v1538_v10 = vpop.f32.mrf.mxu0 }
 0x187   :  { %v1539_v9 = vadd.f32 %v1538_v10, %v1496_v18  ;;  %v5448_v10 = vld [vmem:[%s7648_s6 + $0x20] ss:$16 sps:$4 sm:$0xff]   ;;  %v5465_v18 = vld [vmem:[%s7650_s8 + $0x50c] ss:$28 sps:$4 sm:$0xff]  }
 0x188   :  { %v1540_v13 = vpop.f32.mrf.mxu0 }
 0x189   :  { %v1541_v30 = vadd.f32 %v1540_v13, %v1498_v23  ;;  %v5456_v13 = vld [vmem:[%s7648_s6 + $0x4] ss:$16 sps:$4 sm:$0xff]  }
 0x18a   :  { %v1620_v17 = vpop.f32.mrf.mxu0 }
 0x18b   :  { %v1577_v16 = vpop.f32.mrf.mxu1 }
 0x18c   :  { %v1622_v22 = vpop.f32.mrf.mxu0  ;;  %v1578_v27 = vadd.f32 %v1577_v16, %v1535_v20  ;;  %v5457_v16 = vld [vmem:[%s7648_s6 + $0x8] ss:$16 sps:$4 sm:$0xff]   ;;  %v1705_v20 = vld [vmem:[%s7647_s5] sm:$0x3] }
 0x18d   :  { %v1579_v21 = vpop.f32.mrf.mxu1  ;;  %v1714_v23 = vrot.slane %v1705_v20, %v6787_v24 }
 0x18e   :  { %v1580_v26 = vadd.f32 %v1579_v21, %v1537_v19  ;;  %v1624_v29 = vpop.f32.mrf.mxu0  ;;  %v1621_v36 = vadd.f32 %v1620_v17, %v1578_v27  ;;  %v5462_v17 = vld [vmem:[%s7650_s8 + $0x18c] ss:$28 sps:$4 sm:$0xff]  }
 0x18f   :  { %v1581_v28 = vpop.f32.mrf.mxu1 }
 0x190   :  { %v1582_v4 = vadd.f32 %v1581_v28, %v1539_v9  ;;  %v1626_v32 = vpop.f32.mrf.mxu0  ;;  %v1623_v33 = vadd.f32 %v1622_v22, %v1580_v26  ;;  %v1631_v41 = vmax.f32 %v1621_v36, 0.0  ;;  %v1710_v22 = vrot.slane %v1705_v20, %v6790_v25  ;;  %v5502_v20 = vld [vmem:[%s7650_s8] ss:$28 sps:$4 sm:$0xff]  }
 0x191   :  { %v1583_v31 = vpop.f32.mrf.mxu1 }
 0x192   :  { %v1625_v34 = vadd.f32 %v1624_v29, %v1582_v4  ;;  %v1584_v35 = vadd.f32 %v1583_v31, %v1541_v30  ;;  %v1632_v39 = vmax.f32 %v1623_v33, 0.0 }
 0x194   :  { %v1627_v37 = vadd.f32 %v1626_v32, %v1584_v35  ;;  %v1635_v38 = vmax.f32 %v1625_v34, 0.0 }
 0x196   :  { %v1636_v40 = vmax.f32 %v1627_v37, 0.0  ;;  %v1639_v43 = vpack.c.bf16 %v1635_v38, %v1631_v41 }
 0x198   :  { %v1640_v42 = vpack.c.bf16 %v1636_v40, %v1632_v39 }
 0x19a   :  { %2112 = vmatprep.mubr.bf16.mxu1 %v1640_v42 }
 0x19b   :  { %2113 = vmatmul.mubr.bf16.vlgmr.msra.gmra.mxu1 %v1639_v43  ;;  %v2123_v43 = vld [vmem:[%s7643_s1] sm:$0xff] }
 0x19c   :  { %2425 = vmatprep.mubr.bf16.mxu1 %v5886_v11  ;;  %2394 = vmatpush1.bf16.msra.mxu1 %v5415_v47  ;;  %v5420_v11 = vld [vmem:[%s7648_s6 + $0xc4] ss:$16 sps:$4 sm:$0xff]  }
 0x19d   :  { %2352 = vmatprep.subr.bf16.mxu0 %v5420_v11  ;;  %2395 = vmatprep.subr.bf16.mxu1 %v5423_v48 }
 0x19e   :  { %2353 = vmatpush1.bf16.msra.mxu0 %v5418_v49  ;;  %v5460_v49 = vld [vmem:[%s7650_s8 + $0x188] ss:$28 sps:$4 sm:$0xff]  }
 0x19f   :  { %2354 = vmatprep.subr.bf16.mxu0 %v5426_v52 }
 0x1a0   :  { %2396 = vmatpush1.bf16.msra.mxu1 %v5421_v50  ;;  %v5463_v50 = vld [vmem:[%s7650_s8 + $0x508] ss:$28 sps:$4 sm:$0xff]  }
 0x1a1   :  { %2397 = vmatprep.subr.bf16.mxu1 %v5429_v53  ;;  %v5468_v53 = vld [vmem:[%s7650_s8 + $0x154] ss:$28 sps:$4 sm:$0xff]  }
 0x1a2   :  { %2355 = vmatpush1.bf16.msra.mxu0 %v5424_v54  ;;  %v5471_v54 = vld [vmem:[%s7650_s8 + $0x4d4] ss:$28 sps:$4 sm:$0xff]  }
 0x1a3   :  { %2356 = vmatprep.subr.bf16.mxu0 %v5432_v56  ;;  %v5469_v56 = vld [vmem:[%s7650_s8 + $0x4d0] ss:$28 sps:$4 sm:$0xff]  }
 0x1a4   :  { %2398 = vmatpush1.bf16.msra.mxu1 %v5427_v55  ;;  %v5466_v55 = vld [vmem:[%s7650_s8 + $0x150] ss:$28 sps:$4 sm:$0xff]  }
 0x1a5   :  { %2399 = vmatprep.subr.bf16.mxu1 %v5435_v57  ;;  %v5474_v57 = vld [vmem:[%s7650_s8 + $0x11c] ss:$28 sps:$4 sm:$0xff]  }
 0x1a6   :  { %2357 = vmatpush1.bf16.msra.mxu0 %v5430_v58  ;;  %v5477_v58 = vld [vmem:[%s7650_s8 + $0x49c] ss:$28 sps:$4 sm:$0xff]  }
 0x1a7   :  { %2358 = vmatprep.subr.bf16.mxu0 %v5438_v60  ;;  %v5475_v60 = vld [vmem:[%s7650_s8 + $0x498] ss:$28 sps:$4 sm:$0xff]  }
 0x1a8   :  { %2400 = vmatpush1.bf16.msra.mxu1 %v5433_v59  ;;  %v5472_v59 = vld [vmem:[%s7650_s8 + $0x118] ss:$28 sps:$4 sm:$0xff]  }
 0x1a9   :  { %2401 = vmatprep.subr.bf16.mxu1 %v5441_v63  ;;  %v5478_v63 = vld [vmem:[%s7650_s8 + $0xe0] ss:$28 sps:$4 sm:$0xff]  }
 0x1aa   :  { %2359 = vmatpush1.bf16.msra.mxu0 %v5436_v61  ;;  %v5480_v61 = vld [vmem:[%s7650_s8 + $0xe4] ss:$28 sps:$4 sm:$0xff]  }
 0x1ab   :  { %2360 = vmatprep.subr.bf16.mxu0 %v5444_v0  ;;  %v5481_v0 = vld [vmem:[%s7650_s8 + $0x460] ss:$28 sps:$4 sm:$0xff]  }
 0x1ac   :  { %2402 = vmatpush1.bf16.msra.mxu1 %v5439_v62  ;;  %v5483_v62 = vld [vmem:[%s7650_s8 + $0x464] ss:$28 sps:$4 sm:$0xff]  }
 0x1ad   :  { %2403 = vmatprep.subr.bf16.mxu1 %v5447_v3  ;;  %v5486_v3 = vld [vmem:[%s7650_s8 + $0xac] ss:$28 sps:$4 sm:$0xff]  }
 0x1ae   :  { %2361 = vmatpush1.bf16.msra.mxu0 %v5442_v5  ;;  %v5489_v5 = vld [vmem:[%s7650_s8 + $0x42c] ss:$28 sps:$4 sm:$0xff]  }
 0x1af   :  { %2362 = vmatprep.subr.bf16.mxu0 %v5450_v7  ;;  %v5487_v7 = vld [vmem:[%s7650_s8 + $0x428] ss:$28 sps:$4 sm:$0xff]  }
 0x1b0   :  { %2404 = vmatpush1.bf16.msra.mxu1 %v5445_v6  ;;  %v5484_v6 = vld [vmem:[%s7650_s8 + $0xa8] ss:$28 sps:$4 sm:$0xff]  }
 0x1b1   :  { %2405 = vmatprep.subr.bf16.mxu1 %v5453_v8  ;;  %v5492_v8 = vld [vmem:[%s7650_s8 + $0x74] ss:$28 sps:$4 sm:$0xff]  }
 0x1b2   :  { %2363 = vmatpush1.bf16.msra.mxu0 %v5448_v10  ;;  %v5495_v10 = vld [vmem:[%s7650_s8 + $0x3f4] ss:$28 sps:$4 sm:$0xff]  }
 0x1b3   :  { %2364 = vmatprep.subr.bf16.mxu0 %v5456_v13  ;;  %v5493_v13 = vld [vmem:[%s7650_s8 + $0x3f0] ss:$28 sps:$4 sm:$0xff]  }
 0x1b4   :  { %2406 = vmatpush1.bf16.msra.mxu1 %v5451_v12  ;;  %v5490_v12 = vld [vmem:[%s7650_s8 + $0x70] ss:$28 sps:$4 sm:$0xff]  }
 0x1b5   :  { %2407 = vmatprep.subr.bf16.mxu1 %v5459_v14  ;;  %v5498_v14 = vld [vmem:[%s7650_s8 + $0x3c] ss:$28 sps:$4 sm:$0xff]  }
 0x1b6   :  { %2365 = vmatpush1.bf16.msra.mxu0 %v5454_v15  ;;  %v5501_v15 = vld [vmem:[%s7650_s8 + $0x3bc] ss:$28 sps:$4 sm:$0xff]  }
 0x1b7   :  { %3893 = vmatprep.subr.bf16.mxu0 %v5462_v17  ;;  %v5499_v17 = vld [vmem:[%s7650_s8 + $0x3b8] ss:$28 sps:$4 sm:$0xff]  }
 0x1b8   :  { %2408 = vmatpush1.bf16.msra.mxu1 %v5457_v16  ;;  %v5496_v16 = vld [vmem:[%s7650_s8 + $0x38] ss:$28 sps:$4 sm:$0xff]  }
 0x1b9   :  { %3936 = vmatprep.subr.bf16.mxu1 %v5465_v18  ;;  %v5504_v18 = vld [vmem:[%s7650_s8 + $0x4] ss:$28 sps:$4 sm:$0xff]  }
 0x212   :  { %v2071_v19 = vpop.f32.mrf.mxu0 }
 0x213   :  { %v2072_v26 = vadd.f32 %v2071_v19, %v1710_v22  ;;  %v5507_v19 = vld [vmem:[%s7650_s8 + $0x384] ss:$28 sps:$4 sm:$0xff]  }
 0x214   :  { %v2073_v21 = vpop.f32.mrf.mxu0 }
 0x215   :  { %v2074_v28 = vadd.f32 %v2073_v21, %v1714_v23  ;;  %v5505_v21 = vld [vmem:[%s7650_s8 + $0x380] ss:$28 sps:$4 sm:$0xff]  }
 0x216   :  { %v2075_v9 = vpop.f32.mrf.mxu0 }
 0x217   :  { %v2076_v31 = vadd.f32 %v2075_v9, %v1710_v22  ;;  %v5510_v22 = vld [vmem:[%s7650_s8 + $0x34c] ss:$28 sps:$4 sm:$0xff]  }
 0x218   :  { %v2077_v30 = vpop.f32.mrf.mxu0  ;;  %v5508_v9 = vld [vmem:[%s7650_s8 + $0x348] ss:$28 sps:$4 sm:$0xff]  }
 0x219   :  { %v2078_v34 = vadd.f32 %v2077_v30, %v1714_v23  ;;  %v5513_v23 = vld [vmem:[%s7650_s8 + $0x6cc] ss:$28 sps:$4 sm:$0xff]  }
 0x21a   :  { %v5517_v30 = vld [vmem:[%s7650_s8 + $0x690] ss:$28 sps:$4 sm:$0xff]  }
 0x25b   :  { %v2114_v27 = vpop.f32.mrf.mxu1 }
 0x25c   :  { %v2115_v29 = vadd.f32 %v2114_v27, %v2072_v26  ;;  %v5511_v26 = vld [vmem:[%s7650_s8 + $0x6c8] ss:$28 sps:$4 sm:$0xff]   ;;  %v5516_v27 = vld [vmem:[%s7650_s8 + $0x314] ss:$28 sps:$4 sm:$0xff]  }
 0x25d   :  { %v2116_v4 = vpop.f32.mrf.mxu1 }
 0x25e   :  { %4370 = vst [vmem:[#allocation4] sm:$0xff] %v2115_v29  ;;  %v2117_v32 = vadd.f32 %v2116_v4, %v2074_v28  ;;  %v5519_v28 = vld [vmem:[%s7650_s8 + $0x694] ss:$28 sps:$4 sm:$0xff]   ;;  %v5522_v4 = vld [vmem:[%s7650_s8 + $0x2dc] ss:$28 sps:$4 sm:$0xff]  }
 0x25f   :  { %v2118_v33 = vpop.f32.mrf.mxu1 }
 0x260   :  { %v2125_v35 = vmul.f32 0.5, %v2117_v32  ;;  %4371 = vst [vmem:[#allocation4 + $0x8] sm:$0xff] %v2117_v32  ;;  %v2119_v36 = vadd.f32 %v2118_v33, %v2076_v31  ;;  %v5525_v31 = vld [vmem:[%s7650_s8 + $0x65c] ss:$28 sps:$4 sm:$0xff]  }
 0x261   :  { %v2120_v37 = vpop.f32.mrf.mxu1  ;;  %v5520_v32 = vld [vmem:[%s7650_s8 + $0x2d8] ss:$28 sps:$4 sm:$0xff]  }
 0x262   :  { %v2127_v38 = vmul.f32 1.442695, %v2125_v35  ;;  %4372 = vst [vmem:[#allocation4 + $0x10] sm:$0xff] %v2119_v36  ;;  %v2121_v39 = vadd.f32 %v2120_v37, %v2078_v34  ;;  %v5523_v33 = vld [vmem:[%s7650_s8 + $0x658] ss:$28 sps:$4 sm:$0xff]  }
 0x263   :  { %v5528_v34 = vld [vmem:[%s7650_s8 + $0x2a4] ss:$28 sps:$4 sm:$0xff]  }
 0x264   :  { %5780 = vpow2.f32 %v2127_v38  ;;  %v2126_v40 = vmul.f32 0.5, %v2121_v39  ;;  %4373 = vst [vmem:[#allocation4 + $0x18] sm:$0xff] %v2121_v39  ;;  %v5531_v35 = vld [vmem:[%s7650_s8 + $0x624] ss:$28 sps:$4 sm:$0xff]   ;;  %v5534_v38 = vld [vmem:[%s7650_s8 + $0x26c] ss:$28 sps:$4 sm:$0xff]  }
 0x265   :  { %v5529_v37 = vld [vmem:[%s7650_s8 + $0x620] ss:$28 sps:$4 sm:$0xff]   ;;  %v5537_v39 = vld [vmem:[%s7650_s8 + $0x5ec] ss:$28 sps:$4 sm:$0xff]  }
 0x266   :  { %v2129_v41 = vmul.f32 1.442695, %v2126_v40  ;;  %v5532_v40 = vld [vmem:[%s7650_s8 + $0x268] ss:$28 sps:$4 sm:$0xff]  }
 0x268   :  { %5782 = vpow2.f32 %v2129_v41  ;;  %v5535_v41 = vld [vmem:[%s7650_s8 + $0x5e8] ss:$28 sps:$4 sm:$0xff]  }
 0x271   :  { %v5781_v42 = vpop.eup %5780 }
 0x272   :  { %v2131_v45 = vmul.f32 %v5781_v42, %v2123_v43  ;;  %v5540_v42 = vld [vmem:[%s7650_s8 + $0x234] ss:$28 sps:$4 sm:$0xff]  }
 0x273   :  { %v5543_v43 = vld [vmem:[%s7650_s8 + $0x5b4] ss:$28 sps:$4 sm:$0xff]  }
 0x274   :  { %v2133_v11 = vadd.f32 %v2131_v45, %v2115_v29  ;;  %v5514_v29 = vld [vmem:[%s7650_s8 + $0x310] ss:$28 sps:$4 sm:$0xff]  }
 0x275   :  { %v5783_v46 = vpop.eup %5782  ;;  %v5541_v45 = vld [vmem:[%s7650_s8 + $0x5b0] ss:$28 sps:$4 sm:$0xff]  }
 0x276   :  { %v2132_v47 = vmul.f32 %v5783_v46, %v2124_v44  ;;  %v5538_v44 = vld [vmem:[%s7650_s8 + $0x230] ss:$28 sps:$4 sm:$0xff]   ;;  %v5546_v46 = vld [vmem:[%s7650_s8 + $0x1fc] ss:$28 sps:$4 sm:$0xff]  }
 0x278   :  { %v2134_v48 = vadd.f32 %v2132_v47, %v2119_v36  ;;  %v5526_v36 = vld [vmem:[%s7650_s8 + $0x2a0] ss:$28 sps:$4 sm:$0xff]  }
 0x279   :  { %v5549_v47 = vld [vmem:[%s7650_s8 + $0x57c] ss:$28 sps:$4 sm:$0xff]  }
 0x27a   :  { %v2135_v52 = vpack.c.bf16 %v2134_v48, %v2133_v11  ;;  %v5544_v11 = vld [vmem:[%s7650_s8 + $0x1f8] ss:$28 sps:$4 sm:$0xff]  }
 0x27b   :  { %v5547_v48 = vld [vmem:[%s7650_s8 + $0x578] ss:$28 sps:$4 sm:$0xff]  }
 0x27c   :  { %2383 = vmatmul.mubr.bf16.vlgmr.msra.gmra.mxu0 %v2135_v52  ;;  %2426 = vmatmul.mubr.bf16.vlgmr.msra.gmra.mxu1 %v2135_v52  ;;  %v5550_v52 = vld [vmem:[%s7650_s8 + $0x1c0] ss:$28 sps:$4 sm:$0xff]  }
 0x27d   :  { %3894 = vmatpush1.bf16.msra.mxu0 %v5460_v49  ;;  %3937 = vmatpush1.bf16.msra.mxu1 %v5463_v50  ;;  %v5552_v49 = vld [vmem:[%s7650_s8 + $0x1c4] ss:$28 sps:$4 sm:$0xff]  }
 0x27e   :  { %3895 = vmatprep.subr.bf16.mxu0 %v5468_v53  ;;  %3938 = vmatprep.subr.bf16.mxu1 %v5471_v54  ;;  %v5555_v50 = vld [vmem:[%s7650_s8 + $0x544] ss:$28 sps:$4 sm:$0xff]   ;;  %v5558_v54 = vld [vmem:[%s7650_s8 + $0x194] ss:$28 sps:$4 sm:$0xff]  }
 0x27f   :  { %v5553_v53 = vld [vmem:[%s7650_s8 + $0x540] ss:$28 sps:$4 sm:$0xff]  }
 0x281   :  { %3896 = vmatpush1.bf16.msra.mxu0 %v5466_v55  ;;  %3939 = vmatpush1.bf16.msra.mxu1 %v5469_v56  ;;  %v5561_v55 = vld [vmem:[%s7650_s8 + $0x514] ss:$28 sps:$4 sm:$0xff]   ;;  %v2168_v56 = vld [vmem:[%s7649_s7] sm:$0xf] }
 0x282   :  { %3897 = vmatprep.subr.bf16.mxu0 %v5474_v57  ;;  %3940 = vmatprep.subr.bf16.mxu1 %v5477_v58 }
 0x285   :  { %3898 = vmatpush1.bf16.msra.mxu0 %v5472_v59  ;;  %3941 = vmatpush1.bf16.msra.mxu1 %v5475_v60  ;;  %v2177_v59 = vrot.slane %v2168_v56, %v6787_v24  ;;  %v2185_v60 = vrot.slane %v2168_v56, %v6799_v1 }
 0x286   :  { %3899 = vmatprep.subr.bf16.mxu0 %v5480_v61  ;;  %3942 = vmatprep.subr.bf16.mxu1 %v5483_v62  ;;  %v2173_v61 = vrot.slane %v2168_v56, %v6790_v25  ;;  %v2181_v62 = vrot.slane %v2168_v56, %v6802_v2  ;;  %v5600_v56 = vld [vmem:[%s7650_s8 + $0xc] ss:$28 sps:$4 sm:$0xff]  }
 0x289   :  { %3900 = vmatpush1.bf16.msra.mxu0 %v5478_v63  ;;  %3943 = vmatpush1.bf16.msra.mxu1 %v5481_v0 }
 0x28a   :  { %3901 = vmatprep.subr.bf16.mxu0 %v5486_v3  ;;  %3944 = vmatprep.subr.bf16.mxu1 %v5489_v5 }
 0x28d   :  { %3902 = vmatpush1.bf16.msra.mxu0 %v5484_v6  ;;  %3945 = vmatpush1.bf16.msra.mxu1 %v5487_v7 }
 0x28e   :  { %3903 = vmatprep.subr.bf16.mxu0 %v5492_v8  ;;  %3946 = vmatprep.subr.bf16.mxu1 %v5495_v10 }
 0x291   :  { %3904 = vmatpush1.bf16.msra.mxu0 %v5490_v12  ;;  %3947 = vmatpush1.bf16.msra.mxu1 %v5493_v13 }
 0x292   :  { %3905 = vmatprep.subr.bf16.mxu0 %v5498_v14  ;;  %3948 = vmatprep.subr.bf16.mxu1 %v5501_v15 }
 0x295   :  { %3906 = vmatpush1.bf16.msra.mxu0 %v5496_v16  ;;  %3949 = vmatpush1.bf16.msra.mxu1 %v5499_v17 }
 0x296   :  { %3907 = vmatprep.subr.bf16.mxu0 %v5504_v18  ;;  %3950 = vmatprep.subr.bf16.mxu1 %v5507_v19 }
 0x299   :  { %3908 = vmatpush1.bf16.msra.mxu0 %v5502_v20  ;;  %3951 = vmatpush1.bf16.msra.mxu1 %v5505_v21 }
 0x29a   :  { %3909 = vmatprep.subr.bf16.mxu0 %v5510_v22  ;;  %3952 = vmatprep.subr.bf16.mxu1 %v5513_v23 }
 0x29d   :  { %3910 = vmatpush2.bf16.msra.mxu0 %v5508_v9  ;;  %3953 = vmatpush2.bf16.msra.mxu1 %v5511_v26 }
 0x29e   :  { %3911 = vmatprep.subr.bf16.mxu0 %v5516_v27  ;;  %3954 = vmatprep.subr.bf16.mxu1 %v5519_v28 }
 0x2a1   :  { %3912 = vmatpush2.bf16.msra.mxu0 %v5514_v29  ;;  %3955 = vmatpush2.bf16.msra.mxu1 %v5517_v30  ;;  %v5556_v29 = vld [vmem:[%s7650_s8 + $0x190] ss:$28 sps:$4 sm:$0xff]  }
 0x2a2   :  { %3913 = vmatprep.subr.bf16.mxu0 %v5522_v4  ;;  %3956 = vmatprep.subr.bf16.mxu1 %v5525_v31  ;;  %v5559_v30 = vld [vmem:[%s7650_s8 + $0x510] ss:$28 sps:$4 sm:$0xff]  }
 0x2a5   :  { %3914 = vmatpush2.bf16.msra.mxu0 %v5520_v32  ;;  %3957 = vmatpush2.bf16.msra.mxu1 %v5523_v33  ;;  %v5564_v32 = vld [vmem:[%s7650_s8 + $0x15c] ss:$28 sps:$4 sm:$0xff]  }
 0x2a6   :  { %3915 = vmatprep.subr.bf16.mxu0 %v5528_v34  ;;  %3958 = vmatprep.subr.bf16.mxu1 %v5531_v35  ;;  %v5567_v33 = vld [vmem:[%s7650_s8 + $0x4dc] ss:$28 sps:$4 sm:$0xff]  }
 0x2a7   :  { %v5562_v34 = vld [vmem:[%s7650_s8 + $0x158] ss:$28 sps:$4 sm:$0xff]  }
 0x2a8   :  { %v5565_v35 = vld [vmem:[%s7650_s8 + $0x4d8] ss:$28 sps:$4 sm:$0xff]  }
 0x2a9   :  { %3916 = vmatpush2.bf16.msra.mxu0 %v5526_v36  ;;  %3959 = vmatpush2.bf16.msra.mxu1 %v5529_v37  ;;  %v5570_v36 = vld [vmem:[%s7650_s8 + $0x124] ss:$28 sps:$4 sm:$0xff]  }
 0x2aa   :  { %3917 = vmatprep.subr.bf16.mxu0 %v5534_v38  ;;  %3960 = vmatprep.subr.bf16.mxu1 %v5537_v39  ;;  %v5573_v37 = vld [vmem:[%s7650_s8 + $0x4a4] ss:$28 sps:$4 sm:$0xff]  }
 0x2ab   :  { %v5568_v38 = vld [vmem:[%s7650_s8 + $0x120] ss:$28 sps:$4 sm:$0xff]  }
 0x2ac   :  { %v5571_v39 = vld [vmem:[%s7650_s8 + $0x4a0] ss:$28 sps:$4 sm:$0xff]  }
 0x2ad   :  { %3918 = vmatpush2.bf16.msra.mxu0 %v5532_v40  ;;  %3961 = vmatpush2.bf16.msra.mxu1 %v5535_v41  ;;  %v5576_v40 = vld [vmem:[%s7650_s8 + $0xec] ss:$28 sps:$4 sm:$0xff]  }
 0x2ae   :  { %3919 = vmatprep.subr.bf16.mxu0 %v5540_v42  ;;  %3962 = vmatprep.subr.bf16.mxu1 %v5543_v43  ;;  %v5579_v41 = vld [vmem:[%s7650_s8 + $0x46c] ss:$28 sps:$4 sm:$0xff]  }
 0x2af   :  { %v5574_v42 = vld [vmem:[%s7650_s8 + $0xe8] ss:$28 sps:$4 sm:$0xff]  }
 0x2b0   :  { %v5577_v43 = vld [vmem:[%s7650_s8 + $0x468] ss:$28 sps:$4 sm:$0xff]  }
 0x2b1   :  { %3920 = vmatpush2.bf16.msra.mxu0 %v5538_v44  ;;  %3963 = vmatpush2.bf16.msra.mxu1 %v5541_v45  ;;  %v5582_v44 = vld [vmem:[%s7650_s8 + $0xb4] ss:$28 sps:$4 sm:$0xff]  }
 0x2b2   :  { %3921 = vmatprep.subr.bf16.mxu0 %v5546_v46  ;;  %3964 = vmatprep.subr.bf16.mxu1 %v5549_v47  ;;  %v5585_v45 = vld [vmem:[%s7650_s8 + $0x434] ss:$28 sps:$4 sm:$0xff]  }
 0x2b3   :  { %v5580_v46 = vld [vmem:[%s7650_s8 + $0xb0] ss:$28 sps:$4 sm:$0xff]  }
 0x2b4   :  { %v5583_v47 = vld [vmem:[%s7650_s8 + $0x430] ss:$28 sps:$4 sm:$0xff]  }
 0x2b5   :  { %3922 = vmatpush2.bf16.msra.mxu0 %v5544_v11  ;;  %3965 = vmatpush2.bf16.msra.mxu1 %v5547_v48  ;;  %v5588_v11 = vld [vmem:[%s7650_s8 + $0x7c] ss:$28 sps:$4 sm:$0xff]  }
 0x2b6   :  { %3923 = vmatprep.subr.bf16.mxu0 %v5552_v49  ;;  %3966 = vmatprep.subr.bf16.mxu1 %v5555_v50  ;;  %v5591_v48 = vld [vmem:[%s7650_s8 + $0x3fc] ss:$28 sps:$4 sm:$0xff]  }
 0x2b7   :  { %v5586_v49 = vld [vmem:[%s7650_s8 + $0x78] ss:$28 sps:$4 sm:$0xff]  }
 0x2b8   :  { %v5589_v50 = vld [vmem:[%s7650_s8 + $0x3f8] ss:$28 sps:$4 sm:$0xff]  }
 0x2b9   :  { %3924 = vmatpush2.bf16.msra.mxu0 %v5550_v52  ;;  %3967 = vmatpush2.bf16.msra.mxu1 %v5553_v53  ;;  %v5594_v52 = vld [vmem:[%s7650_s8 + $0x44] ss:$28 sps:$4 sm:$0xff]  }
 0x2ba   :  { %3979 = vmatprep.subr.bf16.mxu0 %v5558_v54  ;;  %4022 = vmatprep.subr.bf16.mxu1 %v5561_v55  ;;  %v5597_v53 = vld [vmem:[%s7650_s8 + $0x3c4] ss:$28 sps:$4 sm:$0xff]  }
 0x2bb   :  { %v5592_v54 = vld [vmem:[%s7650_s8 + $0x40] ss:$28 sps:$4 sm:$0xff]  }
 0x2bc   :  { %v5595_v55 = vld [vmem:[%s7650_s8 + $0x3c0] ss:$28 sps:$4 sm:$0xff]  }
 0x33c   :  { %v2384_v57 = vpop.f32.mrf.mxu0  ;;  %v2427_v58 = vpop.f32.mrf.mxu1 }
 0x33d   :  { %v2385_v12 = vadd.f32 %v2384_v57, %v2173_v61  ;;  %v2428_v13 = vadd.f32 %v2427_v58, %v2181_v62  ;;  %v5603_v57 = vld [vmem:[%s7650_s8 + $0x38c] ss:$28 sps:$4 sm:$0xff]  }
 0x33e   :  { %v2386_v63 = vpop.f32.mrf.mxu0  ;;  %v2429_v0 = vpop.f32.mrf.mxu1  ;;  %v5598_v58 = vld [vmem:[%s7650_s8 + $0x8] ss:$28 sps:$4 sm:$0xff]  }
 0x33f   :  { %v2387_v6 = vadd.f32 %v2386_v63, %v2177_v59  ;;  %v2430_v7 = vadd.f32 %v2429_v0, %v2185_v60  ;;  %v2436_v9 = vmax.f32 %v2385_v12, 0.0  ;;  %v2438_v26 = vmax.f32 %v2428_v13, 0.0  ;;  %v5607_v63 = vld [vmem:[%s7650_s8 + $0x6d0] ss:$28 sps:$4 sm:$0xff]   ;;  %v5612_v0 = vld [vmem:[%s7650_s8 + $0x31c] ss:$28 sps:$4 sm:$0xff]  }
 0x340   :  { %v2388_v3 = vpop.f32.mrf.mxu0  ;;  %v2431_v5 = vpop.f32.mrf.mxu1  ;;  %v5619_v12 = vld [vmem:[%s7650_s8 + $0x660] ss:$28 sps:$4 sm:$0xff]   ;;  %v5624_v13 = vld [vmem:[%s7650_s8 + $0x2ac] ss:$28 sps:$4 sm:$0xff]  }
 0x341   :  { %v2389_v8 = vadd.f32 %v2388_v3, %v2173_v61  ;;  %v2432_v10 = vadd.f32 %v2431_v5, %v2181_v62  ;;  %v2437_v20 = vmax.f32 %v2387_v6, 0.0  ;;  %v2439_v21 = vmax.f32 %v2430_v7, 0.0  ;;  %v5609_v61 = vld [vmem:[%s7650_s8 + $0x6d4] ss:$28 sps:$4 sm:$0xff]   ;;  %v5615_v3 = vld [vmem:[%s7650_s8 + $0x69c] ss:$28 sps:$4 sm:$0xff]  }
 0x342   :  { %v2390_v14 = vpop.f32.mrf.mxu0  ;;  %v2433_v15 = vpop.f32.mrf.mxu1  ;;  %v5604_v62 = vld [vmem:[%s7650_s8 + $0x350] ss:$28 sps:$4 sm:$0xff]   ;;  %v5610_v5 = vld [vmem:[%s7650_s8 + $0x318] ss:$28 sps:$4 sm:$0xff]   ;;  %v5618_v7 = vld [vmem:[%s7650_s8 + $0x2e4] ss:$28 sps:$4 sm:$0xff]  }
 0x343   :  { %v2391_v16 = vadd.f32 %v2390_v14, %v2177_v59  ;;  %v2434_v17 = vadd.f32 %v2433_v15, %v2185_v60  ;;  %v2440_v18 = vmax.f32 %v2389_v8, 0.0  ;;  %v2442_v19 = vmax.f32 %v2432_v10, 0.0  ;;  %v5601_v59 = vld [vmem:[%s7650_s8 + $0x388] ss:$28 sps:$4 sm:$0xff]   ;;  %v5606_v60 = vld [vmem:[%s7650_s8 + $0x354] ss:$28 sps:$4 sm:$0xff]  }
 0x344   :  { %v5613_v6 = vld [vmem:[%s7650_s8 + $0x698] ss:$28 sps:$4 sm:$0xff]   ;;  %v5621_v8 = vld [vmem:[%s7650_s8 + $0x664] ss:$28 sps:$4 sm:$0xff]   ;;  %v5627_v14 = vld [vmem:[%s7650_s8 + $0x62c] ss:$28 sps:$4 sm:$0xff]  }
 0x345   :  { %v2441_v22 = vmax.f32 %v2391_v16, 0.0  ;;  %v2443_v23 = vmax.f32 %v2434_v17, 0.0  ;;  %v7129_v4 = vpack.c.bf16 %v2440_v18, %v2436_v9  ;;  %v7131_v31 = vpack.c.bf16 %v2442_v19, %v2438_v26  ;;  %v5616_v10 = vld [vmem:[%s7650_s8 + $0x2e0] ss:$28 sps:$4 sm:$0xff]   ;;  %v5622_v15 = vld [vmem:[%s7650_s8 + $0x2a8] ss:$28 sps:$4 sm:$0xff]  }
 0x346   :  { %v5625_v16 = vld [vmem:[%s7650_s8 + $0x628] ss:$28 sps:$4 sm:$0xff]   ;;  %v5630_v17 = vld [vmem:[%s7650_s8 + $0x274] ss:$28 sps:$4 sm:$0xff]  }
 0x347   :  { %v7119_v27 = vpack.c.bf16 %v2441_v22, %v2437_v20  ;;  %v7121_v28 = vpack.c.bf16 %v2443_v23, %v2439_v21  ;;  %v5633_v18 = vld [vmem:[%s7650_s8 + $0x5f4] ss:$28 sps:$4 sm:$0xff]   ;;  %v5636_v21 = vld [vmem:[%s7650_s8 + $0x23c] ss:$28 sps:$4 sm:$0xff]   ;;  %v5642_v26 = vld [vmem:[%s7650_s8 + $0x204] ss:$28 sps:$4 sm:$0xff]  }
 0x348   :  { %v5628_v19 = vld [vmem:[%s7650_s8 + $0x270] ss:$28 sps:$4 sm:$0xff]   ;;  %v5639_v22 = vld [vmem:[%s7650_s8 + $0x5bc] ss:$28 sps:$4 sm:$0xff]  }
 0x349   :  { %3925 = vmatprep.mubr.bf16.mxu0 %v7119_v27  ;;  %3968 = vmatprep.mubr.bf16.mxu1 %v7121_v28  ;;  %v5631_v20 = vld [vmem:[%s7650_s8 + $0x5f0] ss:$28 sps:$4 sm:$0xff]   ;;  %v5634_v23 = vld [vmem:[%s7650_s8 + $0x238] ss:$28 sps:$4 sm:$0xff]  }
 0x34a   :  { %3926 = vmatmul.mubr.bf16.vlgmr.msra.gmra.mxu0 %v7129_v4  ;;  %3969 = vmatmul.mubr.bf16.vlgmr.msra.gmra.mxu1 %v7131_v31  ;;  %v5637_v9 = vld [vmem:[%s7650_s8 + $0x5b8] ss:$28 sps:$4 sm:$0xff]  }
 0x34b   :  { %3980 = vmatpush1.bf16.msra.mxu0 %v5556_v29  ;;  %4023 = vmatpush1.bf16.msra.mxu1 %v5559_v30  ;;  %v5645_v29 = vld [vmem:[%s7650_s8 + $0x584] ss:$28 sps:$4 sm:$0xff]  }
 0x34c   :  { %4011 = vmatprep.mubr.bf16.mxu0 %v7119_v27  ;;  %4054 = vmatprep.mubr.bf16.mxu1 %v7121_v28  ;;  %v5640_v30 = vld [vmem:[%s7650_s8 + $0x200] ss:$28 sps:$4 sm:$0xff]  }
 0x34d   :  { %3981 = vmatprep.subr.bf16.mxu0 %v5564_v32  ;;  %4024 = vmatprep.subr.bf16.mxu1 %v5567_v33  ;;  %v5643_v32 = vld [vmem:[%s7650_s8 + $0x580] ss:$28 sps:$4 sm:$0xff]   ;;  %v5648_v33 = vld [vmem:[%s7650_s8 + $0x1cc] ss:$28 sps:$4 sm:$0xff]  }
 0x34f   :  { %3982 = vmatpush1.bf16.msra.mxu0 %v5562_v34  ;;  %4025 = vmatpush1.bf16.msra.mxu1 %v5565_v35  ;;  %v5651_v34 = vld [vmem:[%s7650_s8 + $0x54c] ss:$28 sps:$4 sm:$0xff]  }
 0x350   :  { %3983 = vmatprep.subr.bf16.mxu0 %v5570_v36  ;;  %4026 = vmatprep.subr.bf16.mxu1 %v5573_v37  ;;  %v5646_v35 = vld [vmem:[%s7650_s8 + $0x1c8] ss:$28 sps:$4 sm:$0xff]   ;;  %v5654_v37 = vld [vmem:[%s7650_s8 + $0x19c] ss:$28 sps:$4 sm:$0xff]  }
 0x351   :  { %v5649_v36 = vld [vmem:[%s7650_s8 + $0x548] ss:$28 sps:$4 sm:$0xff]  }
 0x353   :  { %3984 = vmatpush1.bf16.msra.mxu0 %v5568_v38  ;;  %4027 = vmatpush1.bf16.msra.mxu1 %v5571_v39  ;;  %v5657_v38 = vld [vmem:[%s7650_s8 + $0x51c] ss:$28 sps:$4 sm:$0xff]  }
 0x354   :  { %3985 = vmatprep.subr.bf16.mxu0 %v5576_v40  ;;  %4028 = vmatprep.subr.bf16.mxu1 %v5579_v41  ;;  %v5652_v39 = vld [vmem:[%s7650_s8 + $0x198] ss:$28 sps:$4 sm:$0xff]   ;;  %v5660_v41 = vld [vmem:[%s7650_s8 + $0x164] ss:$28 sps:$4 sm:$0xff]  }
 0x355   :  { %v5655_v40 = vld [vmem:[%s7650_s8 + $0x518] ss:$28 sps:$4 sm:$0xff]  }
 0x357   :  { %3986 = vmatpush1.bf16.msra.mxu0 %v5574_v42  ;;  %4029 = vmatpush1.bf16.msra.mxu1 %v5577_v43  ;;  %v5663_v42 = vld [vmem:[%s7650_s8 + $0x4e4] ss:$28 sps:$4 sm:$0xff]  }
 0x358   :  { %3987 = vmatprep.subr.bf16.mxu0 %v5582_v44  ;;  %4030 = vmatprep.subr.bf16.mxu1 %v5585_v45  ;;  %v5658_v43 = vld [vmem:[%s7650_s8 + $0x160] ss:$28 sps:$4 sm:$0xff]   ;;  %v5666_v45 = vld [vmem:[%s7650_s8 + $0x12c] ss:$28 sps:$4 sm:$0xff]  }
 0x359   :  { %v5661_v44 = vld [vmem:[%s7650_s8 + $0x4e0] ss:$28 sps:$4 sm:$0xff]  }
 0x35b   :  { %3988 = vmatpush1.bf16.msra.mxu0 %v5580_v46  ;;  %4031 = vmatpush1.bf16.msra.mxu1 %v5583_v47  ;;  %v5669_v46 = vld [vmem:[%s7650_s8 + $0x4ac] ss:$28 sps:$4 sm:$0xff]  }
 0x35c   :  { %3989 = vmatprep.subr.bf16.mxu0 %v5588_v11  ;;  %4032 = vmatprep.subr.bf16.mxu1 %v5591_v48  ;;  %v5664_v47 = vld [vmem:[%s7650_s8 + $0x128] ss:$28 sps:$4 sm:$0xff]   ;;  %v5672_v48 = vld [vmem:[%s7650_s8 + $0xf4] ss:$28 sps:$4 sm:$0xff]  }
 0x35d   :  { %v5667_v11 = vld [vmem:[%s7650_s8 + $0x4a8] ss:$28 sps:$4 sm:$0xff]  }
 0x35f   :  { %3990 = vmatpush1.bf16.msra.mxu0 %v5586_v49  ;;  %4033 = vmatpush1.bf16.msra.mxu1 %v5589_v50  ;;  %v5675_v49 = vld [vmem:[%s7650_s8 + $0x474] ss:$28 sps:$4 sm:$0xff]  }
 0x360   :  { %3991 = vmatprep.subr.bf16.mxu0 %v5594_v52  ;;  %4034 = vmatprep.subr.bf16.mxu1 %v5597_v53  ;;  %v5670_v50 = vld [vmem:[%s7650_s8 + $0xf0] ss:$28 sps:$4 sm:$0xff]   ;;  %v5678_v53 = vld [vmem:[%s7650_s8 + $0xbc] ss:$28 sps:$4 sm:$0xff]  }
 0x361   :  { %v5673_v52 = vld [vmem:[%s7650_s8 + $0x470] ss:$28 sps:$4 sm:$0xff]  }
 0x363   :  { %3992 = vmatpush1.bf16.msra.mxu0 %v5592_v54  ;;  %4035 = vmatpush1.bf16.msra.mxu1 %v5595_v55  ;;  %v5681_v54 = vld [vmem:[%s7650_s8 + $0x43c] ss:$28 sps:$4 sm:$0xff]  }
 0x364   :  { %3993 = vmatprep.subr.bf16.mxu0 %v5600_v56  ;;  %4036 = vmatprep.subr.bf16.mxu1 %v5603_v57  ;;  %v5676_v55 = vld [vmem:[%s7650_s8 + $0xb8] ss:$28 sps:$4 sm:$0xff]   ;;  %v5684_v57 = vld [vmem:[%s7650_s8 + $0x84] ss:$28 sps:$4 sm:$0xff]  }
 0x365   :  { %v5679_v56 = vld [vmem:[%s7650_s8 + $0x438] ss:$28 sps:$4 sm:$0xff]  }
 0x367   :  { %3994 = vmatpush1.bf16.msra.mxu0 %v5598_v58  ;;  %4037 = vmatpush1.bf16.msra.mxu1 %v5601_v59  ;;  %v5687_v58 = vld [vmem:[%s7650_s8 + $0x404] ss:$28 sps:$4 sm:$0xff]  }
 0x368   :  { %3995 = vmatprep.subr.bf16.mxu0 %v5606_v60  ;;  %4038 = vmatprep.subr.bf16.mxu1 %v5609_v61  ;;  %v5682_v59 = vld [vmem:[%s7650_s8 + $0x80] ss:$28 sps:$4 sm:$0xff]   ;;  %v5690_v61 = vld [vmem:[%s7650_s8 + $0x4c] ss:$28 sps:$4 sm:$0xff]  }
 0x369   :  { %v5685_v60 = vld [vmem:[%s7650_s8 + $0x400] ss:$28 sps:$4 sm:$0xff]  }
 0x36b   :  { %3996 = vmatpush2.bf16.msra.mxu0 %v5604_v62  ;;  %4039 = vmatpush2.bf16.msra.mxu1 %v5607_v63  ;;  %v5693_v62 = vld [vmem:[%s7650_s8 + $0x3cc] ss:$28 sps:$4 sm:$0xff]  }
 0x36c   :  { %3997 = vmatprep.subr.bf16.mxu0 %v5612_v0  ;;  %4040 = vmatprep.subr.bf16.mxu1 %v5615_v3  ;;  %v5688_v63 = vld [vmem:[%s7650_s8 + $0x48] ss:$28 sps:$4 sm:$0xff]   ;;  %v5696_v3 = vld [vmem:[%s7650_s8 + $0x14] ss:$28 sps:$4 sm:$0xff]  }
 0x36d   :  { %v5691_v0 = vld [vmem:[%s7650_s8 + $0x3c8] ss:$28 sps:$4 sm:$0xff]  }
 0x36f   :  { %3998 = vmatpush2.bf16.msra.mxu0 %v5610_v5  ;;  %4041 = vmatpush2.bf16.msra.mxu1 %v5613_v6  ;;  %v5699_v5 = vld [vmem:[%s7650_s8 + $0x394] ss:$28 sps:$4 sm:$0xff]  }
 0x370   :  { %3999 = vmatprep.subr.bf16.mxu0 %v5618_v7  ;;  %4042 = vmatprep.subr.bf16.mxu1 %v5621_v8  ;;  %v5694_v6 = vld [vmem:[%s7650_s8 + $0x10] ss:$28 sps:$4 sm:$0xff]   ;;  %v5702_v8 = vld [vmem:[%s7650_s8 + $0x35c] ss:$28 sps:$4 sm:$0xff]  }
 0x371   :  { %v5697_v7 = vld [vmem:[%s7650_s8 + $0x390] ss:$28 sps:$4 sm:$0xff]  }
 0x373   :  { %4000 = vmatpush2.bf16.msra.mxu0 %v5616_v10  ;;  %4043 = vmatpush2.bf16.msra.mxu1 %v5619_v12  ;;  %v5705_v10 = vld [vmem:[%s7650_s8 + $0x6dc] ss:$28 sps:$4 sm:$0xff]  }
 0x374   :  { %4001 = vmatprep.subr.bf16.mxu0 %v5624_v13  ;;  %4044 = vmatprep.subr.bf16.mxu1 %v5627_v14  ;;  %v5700_v12 = vld [vmem:[%s7650_s8 + $0x358] ss:$28 sps:$4 sm:$0xff]   ;;  %v5708_v14 = vld [vmem:[%s7650_s8 + $0x324] ss:$28 sps:$4 sm:$0xff]  }
 0x375   :  { %v5703_v13 = vld [vmem:[%s7650_s8 + $0x6d8] ss:$28 sps:$4 sm:$0xff]  }
 0x377   :  { %4002 = vmatpush2.bf16.msra.mxu0 %v5622_v15  ;;  %4045 = vmatpush2.bf16.msra.mxu1 %v5625_v16  ;;  %v5711_v15 = vld [vmem:[%s7650_s8 + $0x6a4] ss:$28 sps:$4 sm:$0xff]  }
 0x378   :  { %4003 = vmatprep.subr.bf16.mxu0 %v5630_v17  ;;  %4046 = vmatprep.subr.bf16.mxu1 %v5633_v18  ;;  %v5706_v16 = vld [vmem:[%s7650_s8 + $0x320] ss:$28 sps:$4 sm:$0xff]   ;;  %v5714_v18 = vld [vmem:[%s7650_s8 + $0x2ec] ss:$28 sps:$4 sm:$0xff]  }
 0x379   :  { %v5709_v17 = vld [vmem:[%s7650_s8 + $0x6a0] ss:$28 sps:$4 sm:$0xff]  }
 0x37b   :  { %4004 = vmatpush2.bf16.msra.mxu0 %v5628_v19  ;;  %4047 = vmatpush2.bf16.msra.mxu1 %v5631_v20  ;;  %v5717_v19 = vld [vmem:[%s7650_s8 + $0x66c] ss:$28 sps:$4 sm:$0xff]  }
 0x37c   :  { %4005 = vmatprep.subr.bf16.mxu0 %v5636_v21  ;;  %4048 = vmatprep.subr.bf16.mxu1 %v5639_v22  ;;  %v5712_v20 = vld [vmem:[%s7650_s8 + $0x2e8] ss:$28 sps:$4 sm:$0xff]   ;;  %v5720_v22 = vld [vmem:[%s7650_s8 + $0x2b4] ss:$28 sps:$4 sm:$0xff]  }
 0x37d   :  { %v5715_v21 = vld [vmem:[%s7650_s8 + $0x668] ss:$28 sps:$4 sm:$0xff]  }
 0x37f   :  { %4006 = vmatpush2.bf16.msra.mxu0 %v5634_v23  ;;  %4049 = vmatpush2.bf16.msra.mxu1 %v5637_v9  ;;  %v5723_v23 = vld [vmem:[%s7650_s8 + $0x634] ss:$28 sps:$4 sm:$0xff]  }
 0x380   :  { %4007 = vmatprep.subr.bf16.mxu0 %v5642_v26  ;;  %4050 = vmatprep.subr.bf16.mxu1 %v5645_v29  ;;  %v5718_v9 = vld [vmem:[%s7650_s8 + $0x2b0] ss:$28 sps:$4 sm:$0xff]   ;;  %v5726_v29 = vld [vmem:[%s7650_s8 + $0x27c] ss:$28 sps:$4 sm:$0xff]  }
 0x381   :  { %v5721_v26 = vld [vmem:[%s7650_s8 + $0x630] ss:$28 sps:$4 sm:$0xff]  }
 0x383   :  { %4008 = vmatpush2.bf16.msra.mxu0 %v5640_v30  ;;  %4051 = vmatpush2.bf16.msra.mxu1 %v5643_v32  ;;  %v5729_v30 = vld [vmem:[%s7650_s8 + $0x5fc] ss:$28 sps:$4 sm:$0xff]  }
 0x384   :  { %4009 = vmatprep.subr.bf16.mxu0 %v5648_v33  ;;  %4052 = vmatprep.subr.bf16.mxu1 %v5651_v34  ;;  %v5724_v32 = vld [vmem:[%s7650_s8 + $0x278] ss:$28 sps:$4 sm:$0xff]   ;;  %v5732_v34 = vld [vmem:[%s7650_s8 + $0x244] ss:$28 sps:$4 sm:$0xff]  }
 0x385   :  { %v5727_v33 = vld [vmem:[%s7650_s8 + $0x5f8] ss:$28 sps:$4 sm:$0xff]  }
 0x387   :  { %4010 = vmatpush2.bf16.msra.mxu0 %v5646_v35  ;;  %4053 = vmatpush2.bf16.msra.mxu1 %v5649_v36  ;;  %v5735_v35 = vld [vmem:[%s7650_s8 + $0x5c4] ss:$28 sps:$4 sm:$0xff]  }
 0x388   :  { %4065 = vmatprep.subr.bf16.mxu0 %v5654_v37  ;;  %4108 = vmatprep.subr.bf16.mxu1 %v5657_v38  ;;  %v5730_v36 = vld [vmem:[%s7650_s8 + $0x240] ss:$28 sps:$4 sm:$0xff]   ;;  %v5738_v38 = vld [vmem:[%s7650_s8 + $0x20c] ss:$28 sps:$4 sm:$0xff]  }
 0x389   :  { %v5733_v37 = vld [vmem:[%s7650_s8 + $0x5c0] ss:$28 sps:$4 sm:$0xff]  }
 0x38a   :  { %4012 = vmatmul.mubr.bf16.vlgmr.msra.gmra.mxu0 %v7129_v4  ;;  %4055 = vmatmul.mubr.bf16.vlgmr.msra.gmra.mxu1 %v7131_v31 }
 0x38b   :  { %4066 = vmatpush1.bf16.msra.mxu0 %v5652_v39  ;;  %4097 = vmatprep.mubr.bf16.mxu0 %v7119_v27  ;;  %v5741_v39 = vld [vmem:[%s7650_s8 + $0x58c] ss:$28 sps:$4 sm:$0xff]  }
 0x38c   :  { %4109 = vmatpush1.bf16.msra.mxu1 %v5655_v40  ;;  %4140 = vmatprep.mubr.bf16.mxu1 %v7121_v28  ;;  %v5736_v40 = vld [vmem:[%s7650_s8 + $0x208] ss:$28 sps:$4 sm:$0xff]  }
 0x38d   :  { %4067 = vmatprep.subr.bf16.mxu0 %v5660_v41  ;;  %4110 = vmatprep.subr.bf16.mxu1 %v5663_v42  ;;  %v5739_v41 = vld [vmem:[%s7650_s8 + $0x588] ss:$28 sps:$4 sm:$0xff]   ;;  %v5744_v42 = vld [vmem:[%s7650_s8 + $0x1d4] ss:$28 sps:$4 sm:$0xff]  }
 0x38f   :  { %4068 = vmatpush1.bf16.msra.mxu0 %v5658_v43  ;;  %v5747_v43 = vld [vmem:[%s7650_s8 + $0x554] ss:$28 sps:$4 sm:$0xff]  }
 0x390   :  { %4111 = vmatpush1.bf16.msra.mxu1 %v5661_v44  ;;  %4069 = vmatprep.subr.bf16.mxu0 %v5666_v45  ;;  %v5742_v44 = vld [vmem:[%s7650_s8 + $0x1d0] ss:$28 sps:$4 sm:$0xff]  }
 0x391   :  { %4112 = vmatprep.subr.bf16.mxu1 %v5669_v46  ;;  %v5745_v45 = vld [vmem:[%s7650_s8 + $0x550] ss:$28 sps:$4 sm:$0xff]   ;;  %v5748_v46 = vld [vmem:[%s7650_s8 + $0x360] ss:$28 sps:$4 sm:$0xff]  }
 0x393   :  { %4070 = vmatpush1.bf16.msra.mxu0 %v5664_v47  ;;  %v5749_v47 = vld [vmem:[%s7650_s8 + $0x6e0] ss:$28 sps:$4 sm:$0xff]  }
 0x394   :  { %4113 = vmatpush1.bf16.msra.mxu1 %v5667_v11  ;;  %4071 = vmatprep.subr.bf16.mxu0 %v5672_v48  ;;  %v5750_v11 = vld [vmem:[%s7650_s8 + $0x1a0] ss:$28 sps:$4 sm:$0xff]  }
 0x395   :  { %4114 = vmatprep.subr.bf16.mxu1 %v5675_v49  ;;  %v5751_v48 = vld [vmem:[%s7650_s8 + $0x520] ss:$28 sps:$4 sm:$0xff]   ;;  %v5752_v49 = vld [vmem:[%s7650_s8 + $0x328] ss:$28 sps:$4 sm:$0xff]  }
 0x397   :  { %4072 = vmatpush1.bf16.msra.mxu0 %v5670_v50  ;;  %v5753_v50 = vld [vmem:[%s7650_s8 + $0x6a8] ss:$28 sps:$4 sm:$0xff]  }
 0x398   :  { %4115 = vmatpush1.bf16.msra.mxu1 %v5673_v52  ;;  %4073 = vmatprep.subr.bf16.mxu0 %v5678_v53  ;;  %v5754_v52 = vld [vmem:[%s7650_s8 + $0x168] ss:$28 sps:$4 sm:$0xff]  }
 0x399   :  { %4116 = vmatprep.subr.bf16.mxu1 %v5681_v54  ;;  %v5755_v53 = vld [vmem:[%s7650_s8 + $0x4e8] ss:$28 sps:$4 sm:$0xff]   ;;  %v5756_v54 = vld [vmem:[%s7650_s8 + $0x2f0] ss:$28 sps:$4 sm:$0xff]  }
 0x39b   :  { %4074 = vmatpush1.bf16.msra.mxu0 %v5676_v55  ;;  %v5757_v55 = vld [vmem:[%s7650_s8 + $0x670] ss:$28 sps:$4 sm:$0xff]  }
 0x39c   :  { %4117 = vmatpush1.bf16.msra.mxu1 %v5679_v56  ;;  %4075 = vmatprep.subr.bf16.mxu0 %v5684_v57  ;;  %v5759_v56 = vld [vmem:[%s7650_s8 + $0x4b0] ss:$28 sps:$4 sm:$0xff]   ;;  %v5761_v57 = vld [vmem:[%s7650_s8 + $0x638] ss:$28 sps:$4 sm:$0xff]  }
 0x39d   :  { %4118 = vmatprep.subr.bf16.mxu1 %v5687_v58  ;;  %v5762_v58 = vld [vmem:[%s7650_s8 + $0xf8] ss:$28 sps:$4 sm:$0xff]  }
 0x39f   :  { %4076 = vmatpush1.bf16.msra.mxu0 %v5682_v59  ;;  %v5763_v59 = vld [vmem:[%s7650_s8 + $0x478] ss:$28 sps:$4 sm:$0xff]  }
 0x3a0   :  { %4119 = vmatpush1.bf16.msra.mxu1 %v5685_v60  ;;  %4077 = vmatprep.subr.bf16.mxu0 %v5690_v61  ;;  %v5764_v60 = vld [vmem:[%s7650_s8 + $0x280] ss:$28 sps:$4 sm:$0xff]  }
 0x3a1   :  { %4120 = vmatprep.subr.bf16.mxu1 %v5693_v62  ;;  %v5765_v61 = vld [vmem:[%s7650_s8 + $0x600] ss:$28 sps:$4 sm:$0xff]  }
 0x3a2   :  { %v5766_v62 = vld [vmem:[%s7650_s8 + $0xc0] ss:$28 sps:$4 sm:$0xff]  }
 0x3a3   :  { %4078 = vmatpush1.bf16.msra.mxu0 %v5688_v63  ;;  %v5767_v63 = vld [vmem:[%s7650_s8 + $0x440] ss:$28 sps:$4 sm:$0xff]  }
 0x3a4   :  { %4121 = vmatpush1.bf16.msra.mxu1 %v5691_v0  ;;  %4079 = vmatprep.subr.bf16.mxu0 %v5696_v3  ;;  %v5768_v0 = vld [vmem:[%s7650_s8 + $0x248] ss:$28 sps:$4 sm:$0xff]  }
 0x3a5   :  { %4122 = vmatprep.subr.bf16.mxu1 %v5699_v5  ;;  %v5769_v3 = vld [vmem:[%s7650_s8 + $0x5c8] ss:$28 sps:$4 sm:$0xff]  }
 0x3a6   :  { %v5770_v5 = vld [vmem:[%s7650_s8 + $0x88] ss:$28 sps:$4 sm:$0xff]  }
 0x3a7   :  { %4080 = vmatpush1.bf16.msra.mxu0 %v5694_v6  ;;  %v5771_v6 = vld [vmem:[%s7650_s8 + $0x408] ss:$28 sps:$4 sm:$0xff]  }
 0x3a8   :  { %4123 = vmatpush1.bf16.msra.mxu1 %v5697_v7  ;;  %4081 = vmatprep.subr.bf16.mxu0 %v5702_v8  ;;  %v5772_v7 = vld [vmem:[%s7650_s8 + $0x210] ss:$28 sps:$4 sm:$0xff]  }
 0x3a9   :  { %4124 = vmatprep.subr.bf16.mxu1 %v5705_v10  ;;  %v5773_v8 = vld [vmem:[%s7650_s8 + $0x590] ss:$28 sps:$4 sm:$0xff]  }
 0x3aa   :  { %v5774_v10 = vld [vmem:[%s7650_s8 + $0x50] ss:$28 sps:$4 sm:$0xff]  }
 0x3ab   :  { %4082 = vmatpush2.bf16.msra.mxu0 %v5700_v12  ;;  %v5775_v12 = vld [vmem:[%s7650_s8 + $0x3d0] ss:$28 sps:$4 sm:$0xff]  }
 0x3ac   :  { %4125 = vmatpush2.bf16.msra.mxu1 %v5703_v13  ;;  %4083 = vmatprep.subr.bf16.mxu0 %v5708_v14  ;;  %v5776_v13 = vld [vmem:[%s7650_s8 + $0x1d8] ss:$28 sps:$4 sm:$0xff]  }
 0x3ad   :  { %4126 = vmatprep.subr.bf16.mxu1 %v5711_v15  ;;  %v5777_v14 = vld [vmem:[%s7650_s8 + $0x558] ss:$28 sps:$4 sm:$0xff]  }
 0x3ae   :  { %v5778_v15 = vld [vmem:[%s7650_s8 + $0x18] ss:$28 sps:$4 sm:$0xff]  }
 0x3af   :  { %4084 = vmatpush2.bf16.msra.mxu0 %v5706_v16  ;;  %v5779_v16 = vld [vmem:[%s7650_s8 + $0x398] ss:$28 sps:$4 sm:$0xff]  }
 0x3b0   :  { %4127 = vmatpush2.bf16.msra.mxu1 %v5709_v17  ;;  %4085 = vmatprep.subr.bf16.mxu0 %v5714_v18  ;;  %v7620_v17 = vld [vmem:[%s7651_s9] sm:$0x7f] }
 0x3b1   :  { %4128 = vmatprep.subr.bf16.mxu1 %v5717_v19  ;;  %v2709_v18 = vrot.slane %v7620_v17, %v6790_v25  ;;  %v2713_v19 = vrot.slane %v7620_v17, %v6787_v24 }
 0x3b3   :  { %4086 = vmatpush2.bf16.msra.mxu0 %v5712_v20 }
 0x3b4   :  { %4129 = vmatpush2.bf16.msra.mxu1 %v5715_v21  ;;  %4087 = vmatprep.subr.bf16.mxu0 %v5720_v22 }
 0x3b5   :  { %4130 = vmatprep.subr.bf16.mxu1 %v5723_v23 }
 0x3b7   :  { %4088 = vmatpush2.bf16.msra.mxu0 %v5718_v9 }
 0x3b8   :  { %4131 = vmatpush2.bf16.msra.mxu1 %v5721_v26  ;;  %4089 = vmatprep.subr.bf16.mxu0 %v5726_v29 }
 0x3b9   :  { %4132 = vmatprep.subr.bf16.mxu1 %v5729_v30 }
 0x3bb   :  { %4090 = vmatpush2.bf16.msra.mxu0 %v5724_v32 }
 0x3bc   :  { %4133 = vmatpush2.bf16.msra.mxu1 %v5727_v33  ;;  %4091 = vmatprep.subr.bf16.mxu0 %v5732_v34 }
 0x3bd   :  { %4134 = vmatprep.subr.bf16.mxu1 %v5735_v35 }
 0x3bf   :  { %4092 = vmatpush2.bf16.msra.mxu0 %v5730_v36 }
 0x3c0   :  { %4135 = vmatpush2.bf16.msra.mxu1 %v5733_v37  ;;  %4093 = vmatprep.subr.bf16.mxu0 %v5738_v38 }
 0x3c1   :  { %4136 = vmatprep.subr.bf16.mxu1 %v5741_v39 }
 0x3c3   :  { %4094 = vmatpush2.bf16.msra.mxu0 %v5736_v40 }
 0x3c4   :  { %4137 = vmatpush2.bf16.msra.mxu1 %v5739_v41  ;;  %4095 = vmatprep.subr.bf16.mxu0 %v5744_v42 }
 0x3c5   :  { %4138 = vmatprep.subr.bf16.mxu1 %v5747_v43 }
 0x3c7   :  { %4096 = vmatpush2.bf16.msra.mxu0 %v5742_v44 }
 0x3c8   :  { %4139 = vmatpush2.bf16.msra.mxu1 %v5745_v45  ;;  %4961 = vmatprep.subr.bf16.mxu0 %v5748_v46 }
 0x3c9   :  { %4983 = vmatprep.subr.bf16.mxu1 %v5749_v47 }
 0x3ca   :  { %4098 = vmatmul.mubr.bf16.vlgmr.msra.gmra.mxu0 %v7129_v4 }
 0x3cb   :  { %4141 = vmatmul.mubr.bf16.vlgmr.msra.gmra.mxu1 %v7131_v31  ;;  %4962 = vmatpush3.bf16.msra.mxu0 %v5750_v11 }
 0x3cc   :  { %4183 = vmatprep.mubr.bf16.mxu0 %v7119_v27  ;;  %4984 = vmatpush3.bf16.msra.mxu1 %v5751_v48  ;;  %v5758_v27 = vld [vmem:[%s7650_s8 + $0x130] ss:$28 sps:$4 sm:$0xff]  }
 0x3cd   :  { %4224 = vmatprep.mubr.bf16.mxu1 %v7121_v28  ;;  %4963 = vmatprep.subr.bf16.mxu0 %v5752_v49  ;;  %v5760_v28 = vld [vmem:[%s7650_s8 + $0x2b8] ss:$28 sps:$4 sm:$0xff]   ;;  %s5887_s8 = smov [#allocation4]  }
 0x3ce   :  { %4985 = vmatprep.subr.bf16.mxu1 %v5753_v50  ;;  %s4391_s9 = sshll.u32 %s5887_s8, 4  ;;  %s4392_s9 = int_to_ptr.vmem [resolvable:$true] %s4391_s9 }
 0x3cf   :  { %4964 = vmatpush3.bf16.msra.mxu0 %v5754_v52  ;;  %s5842_s12 = scalar_lea.vmem %s4392_s9, 512  ;;  %p5847_p1 = scmp.lt.s32.totalorder %s4392_s9, %s4392_s9 }
 0x3d0   :  { %4986 = vmatpush3.bf16.msra.mxu1 %v5755_v53  ;;  %4965 = vmatprep.subr.bf16.mxu0 %v5756_v54  ;;  %v2717_v54 = vrot.slane %v7620_v17, %v6802_v2  ;;  %p5843_p0 = scmp.ne.s32.totalorder %s4392_s9, %s5842_s12  ;;  %p5848_p2 = scmp.lt.s32.totalorder %s5842_s12, %s5842_s12 }
 0x3d1   :  { %4987 = vmatprep.subr.bf16.mxu1 %v5757_v55  ;;  %v2721_v55 = vrot.slane %v7620_v17, %v6799_v1 }
 0x3d2   :  { %p5849_p3 = por %p5848_p2, %p5847_p1 }
 0x3d3   :  { %4966 = vmatpush3.bf16.msra.mxu0 %v5758_v27 }
 0x3d4   :  { %4988 = vmatpush3.bf16.msra.mxu1 %v5759_v56  ;;  %4967 = vmatprep.subr.bf16.mxu0 %v5760_v28  ;;  %p5850_p4 = pnand %p5849_p3, %p5843_p0 }
 0x3d5   :  { %4989 = vmatprep.subr.bf16.mxu1 %v5761_v57 }
 0x3d7   :  { %4968 = vmatpush3.bf16.msra.mxu0 %v5762_v58 }
 0x3d8   :  { %4990 = vmatpush3.bf16.msra.mxu1 %v5763_v59  ;;  %4969 = vmatprep.subr.bf16.mxu0 %v5764_v60 }
 0x3d9   :  { %4991 = vmatprep.subr.bf16.mxu1 %v5765_v61 }
 0x3db   :  { %4970 = vmatpush3.bf16.msra.mxu0 %v5766_v62 }
 0x3dc   :  { %4992 = vmatpush3.bf16.msra.mxu1 %v5767_v63  ;;  %4971 = vmatprep.subr.bf16.mxu0 %v5768_v0 }
 0x3dd   :  { %4993 = vmatprep.subr.bf16.mxu1 %v5769_v3 }
 0x3df   :  { %4972 = vmatpush3.bf16.msra.mxu0 %v5770_v5 }
 0x3e0   :  { %4994 = vmatpush3.bf16.msra.mxu1 %v5771_v6  ;;  %4973 = vmatprep.subr.bf16.mxu0 %v5772_v7 }
 0x3e1   :  { %4995 = vmatprep.subr.bf16.mxu1 %v5773_v8 }
 0x3e3   :  { %4974 = vmatpush3.bf16.msra.mxu0 %v5774_v10 }
 0x3e4   :  { %4996 = vmatpush3.bf16.msra.mxu1 %v5775_v12  ;;  %4975 = vmatprep.subr.bf16.mxu0 %v5776_v13 }
 0x3e5   :  { %4997 = vmatprep.subr.bf16.mxu1 %v5777_v14 }
 0x3e7   :  { %4976 = vmatpush3.bf16.msra.mxu0 %v5778_v15 }
 0x3e8   :  { %4998 = vmatpush3.bf16.msra.mxu1 %v5779_v16 }
 0x3ea   :  { %4184 = vmatmul.mubr.bf16.vlgmr.msra.gmra.mxu0 %v7129_v4 }
 0x3eb   :  { %4225 = vmatmul.mubr.bf16.vlgmr.msra.gmra.mxu1 %v7131_v31 }
 0x40a   :  { %v3927_v20 = vpop.f32.mrf.mxu0  ;;  %v3970_v21 = vpop.f32.mrf.mxu1 }
 0x40b   :  { %v3928_v22 = vadd.f32 %v3927_v20, %v2709_v18 }
 0x40c   :  { %v3929_v23 = vpop.f32.mrf.mxu0  ;;  %v3972_v9 = vpop.f32.mrf.mxu1 }
 0x40d   :  { %v3971_v26 = vadd.f32 %v3970_v21, %v3928_v22  ;;  %v3930_v4 = vadd.f32 %v3929_v23, %v2713_v19 }
 0x40e   :  { %v3931_v29 = vpop.f32.mrf.mxu0  ;;  %v3974_v31 = vpop.f32.mrf.mxu1 }
 0x40f   :  { %v4931_v30 = vmul.f32 -1.442695, %v3971_v26  ;;  %v3973_v32 = vadd.f32 %v3972_v9, %v3930_v4  ;;  %v3932_v33 = vadd.f32 %v3931_v29, %v2709_v18 }
 0x410   :  { %v3933_v34 = vpop.f32.mrf.mxu0  ;;  %v3976_v37 = vpop.f32.mrf.mxu1 }
 0x411   :  { %5784 = vpow2.f32 %v4931_v30  ;;  %v4932_v35 = vmul.f32 -1.442695, %v3973_v32  ;;  %v3975_v36 = vadd.f32 %v3974_v31, %v3932_v33  ;;  %v3934_v25 = vadd.f32 %v3933_v34, %v2713_v19 }
 0x413   :  { %5786 = vpow2.f32 %v4932_v35  ;;  %v4938_v24 = vmul.f32 -1.442695, %v3975_v36  ;;  %v3977_v38 = vadd.f32 %v3976_v37, %v3934_v25 }
 0x415   :  { %5788 = vpow2.f32 %v4938_v24  ;;  %v4939_v39 = vmul.f32 -1.442695, %v3977_v38 }
 0x417   :  { %5790 = vpow2.f32 %v4939_v39 }
 0x41e   :  { %v5785_v40 = vpop.eup %5784 }
 0x41f   :  { %v4275_v41 = vadd.f32 1.0, %v5785_v40 }
 0x420   :  { %v5787_v42 = vpop.eup %5786 }
 0x421   :  { %v4276_v43 = vadd.f32 1.0, %v5787_v42  ;;  %5792 = vrcp.f32 %v4275_v41 }
 0x422   :  { %v5789_v44 = vpop.eup %5788 }
 0x423   :  { %5794 = vrcp.f32 %v4276_v43  ;;  %v4282_v45 = vadd.f32 1.0, %v5789_v44 }
 0x424   :  { %v5791_v46 = vpop.eup %5790 }
 0x425   :  { %v4283_v47 = vadd.f32 1.0, %v5791_v46  ;;  %5796 = vrcp.f32 %v4282_v45 }
 0x427   :  { %5798 = vrcp.f32 %v4283_v47 }
 0x42e   :  { %v5793_v11 = vpop.eup %5792 }
 0x430   :  { %v5795_v48 = vpop.eup %5794 }
 0x431   :  { %v4953_v49 = vpack.c.bf16 %v5795_v48, %v5793_v11 }
 0x432   :  { %v5797_v50 = vpop.eup %5796 }
 0x433   :  { %4361 = vst [vmem:[#allocation2] sm:$0xff] %v4953_v49 }
 0x434   :  { %v5799_v52 = vpop.eup %5798 }
 0x435   :  { %v4957_v53 = vpack.c.bf16 %v5799_v52, %v5797_v50 }
 0x437   :  { %4366 = vst [vmem:[#allocation2 + $0x1c] sm:$0xff] %v4957_v53 }
 0x44a   :  { %v4013_v27 = vpop.f32.mrf.mxu0  ;;  %v4056_v56 = vpop.f32.mrf.mxu1 }
 0x44b   :  { %v4014_v28 = vadd.f32 %v4013_v27, %v2717_v54 }
 0x44c   :  { %v4015_v57 = vpop.f32.mrf.mxu0  ;;  %v4058_v58 = vpop.f32.mrf.mxu1 }
 0x44d   :  { %v4057_v59 = vadd.f32 %v4056_v56, %v4014_v28  ;;  %v4016_v60 = vadd.f32 %v4015_v57, %v2721_v55 }
 0x44e   :  { %v4017_v61 = vpop.f32.mrf.mxu0  ;;  %v4060_v62 = vpop.f32.mrf.mxu1 }
 0x44f   :  { %v4933_v63 = vmul.f32 -1.442695, %v4057_v59  ;;  %v4059_v0 = vadd.f32 %v4058_v58, %v4016_v60  ;;  %v4018_v3 = vadd.f32 %v4017_v61, %v2717_v54 }
 0x450   :  { %v4019_v5 = vpop.f32.mrf.mxu0  ;;  %v4062_v8 = vpop.f32.mrf.mxu1 }
 0x451   :  { %5800 = vpow2.f32 %v4933_v63  ;;  %v4934_v6 = vmul.f32 -1.442695, %v4059_v0  ;;  %v4061_v7 = vadd.f32 %v4060_v62, %v4018_v3  ;;  %v4020_v2 = vadd.f32 %v4019_v5, %v2721_v55 }
 0x453   :  { %5802 = vpow2.f32 %v4934_v6  ;;  %v4940_v1 = vmul.f32 -1.442695, %v4061_v7  ;;  %v4063_v10 = vadd.f32 %v4062_v8, %v4020_v2 }
 0x455   :  { %5804 = vpow2.f32 %v4940_v1  ;;  %v4941_v12 = vmul.f32 -1.442695, %v4063_v10 }
 0x457   :  { %5806 = vpow2.f32 %v4941_v12 }
 0x45e   :  { %v5801_v13 = vpop.eup %5800 }
 0x45f   :  { %5853 = shalt.err (!%p5850_p4)
}
 0x460   :  { %s5888_s3 = smov 256   ;;  %s5889_s5 = smov 16   ;;  %v4277_v14 = vadd.f32 1.0, %v5801_v13  ;;  %v5803_v15 = vpop.eup %5802  ;;  %v2724_v31 = vsub.s32 4, %v6784_v51  ;;  %v2728_v30 = vsub.s32 5, %v6784_v51  ;;  %v2732_v58 = vsub.s32 6, %v6784_v51 }
 0x461   :  { %4397 = dma.vmem_to_hbm [thread:$0]  %s4392_s9, 512, %s7653_s11, [#allocation5], %s5888_s3, %s5888_s3, %s5889_s5   ;;  %v4278_v16 = vadd.f32 1.0, %v5803_v15  ;;  %vm4364_vm1 = vcmask 125952  }
 0x462   :  { %v5805_v18 = vpop.eup %5804  ;;  %5808 = vrcp.f32 %v4277_v14  ;;  %v2725_v32 = vrot.slane %v7620_v17, %v2724_v31  ;;  %v2729_v33 = vrot.slane %v7620_v17, %v2728_v30  ;;  %v2733_v61 = vrot.slane %v7620_v17, %v2732_v58  ;;  %s5890_s11 = smov [#allocation2]  }
 0x463   :  { %5810 = vrcp.f32 %v4278_v16  ;;  %v4284_v19 = vadd.f32 1.0, %v5805_v18  ;;  %s4379_s13 = sshll.u32 %s5890_s11, 4  ;;  %s4380_s13 = int_to_ptr.vmem [resolvable:$true] %s4379_s13 }
 0x464   :  { %v5807_v20 = vpop.eup %5806  ;;  %s5862_s7 = scalar_lea.vmem %s4380_s13, 896  ;;  %p5867_p6 = scmp.lt.s32.totalorder %s4380_s13, %s4380_s13 }
 0x465   :  { %v4285_v21 = vadd.f32 1.0, %v5807_v20  ;;  %5812 = vrcp.f32 %v4284_v19  ;;  %p5863_p5 = scmp.ne.s32.totalorder %s4380_s13, %s5862_s7  ;;  %p5868_p7 = scmp.lt.s32.totalorder %s5862_s7, %s5862_s7 }
 0x467   :  { %5814 = vrcp.f32 %v4285_v21  ;;  %p5869_p8 = por %p5868_p7, %p5867_p6 }
 0x469   :  { %p5870_p9 = pnand %p5869_p8, %p5863_p5 }
 0x46f   :  { %v5809_v22 = vpop.eup %5808 }
 0x470   :  { %v5811_v23 = vpop.eup %5810 }
 0x471   :  { %v4954_v9 = vpack.c.bf16 %v5811_v23, %v5809_v22 }
 0x472   :  { %v5813_v26 = vpop.eup %5812 }
 0x473   :  { %4362 = vst [vmem:[#allocation2 + $0x8] sm:$0xff] %v4954_v9 }
 0x474   :  { %v5815_v4 = vpop.eup %5814 }
 0x475   :  { %v4958_v29 = vpack.c.bf16 %v5815_v4, %v5813_v26 }
 0x477   :  { %4367 = vst [vmem:[#allocation2 + $0x24] sm:$0xff] %v4958_v29 }
 0x48a   :  { %v4099_v34 = vpop.f32.mrf.mxu0 }
 0x48b   :  { %v4100_v35 = vadd.f32 %v4099_v34, %v2725_v32  ;;  %v4142_v36 = vpop.f32.mrf.mxu1 }
 0x48c   :  { %v4101_v25 = vpop.f32.mrf.mxu0 }
 0x48d   :  { %v4143_v37 = vadd.f32 %v4142_v36, %v4100_v35  ;;  %v4102_v24 = vadd.f32 %v4101_v25, %v2729_v33  ;;  %v4144_v38 = vpop.f32.mrf.mxu1 }
 0x48e   :  { %v4103_v39 = vpop.f32.mrf.mxu0 }
 0x48f   :  { %v4935_v40 = vmul.f32 -1.442695, %v4143_v37  ;;  %v4145_v41 = vadd.f32 %v4144_v38, %v4102_v24  ;;  %v4104_v42 = vadd.f32 %v4103_v39, %v2725_v32  ;;  %v4146_v43 = vpop.f32.mrf.mxu1 }
 0x490   :  { %v4105_v44 = vpop.f32.mrf.mxu0 }
 0x491   :  { %5816 = vpow2.f32 %v4935_v40  ;;  %v4936_v45 = vmul.f32 -1.442695, %v4145_v41  ;;  %v4147_v46 = vadd.f32 %v4146_v43, %v4104_v42  ;;  %v4106_v47 = vadd.f32 %v4105_v44, %v2729_v33  ;;  %v4148_v11 = vpop.f32.mrf.mxu1 }
 0x493   :  { %5818 = vpow2.f32 %v4936_v45  ;;  %v4942_v48 = vmul.f32 -1.442695, %v4147_v46  ;;  %v4149_v49 = vadd.f32 %v4148_v11, %v4106_v47 }
 0x495   :  { %5820 = vpow2.f32 %v4942_v48  ;;  %v4943_v50 = vmul.f32 -1.442695, %v4149_v49 }
 0x497   :  { %5822 = vpow2.f32 %v4943_v50 }
 0x49e   :  { %v5817_v52 = vpop.eup %5816 }
 0x49f   :  { %v4279_v53 = vadd.f32 1.0, %v5817_v52 }
 0x4a0   :  { %v5819_v54 = vpop.eup %5818 }
 0x4a1   :  { %v4280_v55 = vadd.f32 1.0, %v5819_v54  ;;  %5824 = vrcp.f32 %v4279_v53 }
 0x4a2   :  { %v5821_v27 = vpop.eup %5820 }
 0x4a3   :  { %5826 = vrcp.f32 %v4280_v55  ;;  %v4286_v56 = vadd.f32 1.0, %v5821_v27 }
 0x4a4   :  { %v5823_v28 = vpop.eup %5822 }
 0x4a5   :  { %v4287_v57 = vadd.f32 1.0, %v5823_v28  ;;  %5828 = vrcp.f32 %v4286_v56 }
 0x4a7   :  { %5830 = vrcp.f32 %v4287_v57 }
 0x4aa   :  { %v4977_v59 = vpop.f32.mrf.mxu0 }
 0x4ab   :  { %v4999_v60 = vpop.f32.mrf.mxu1 }
 0x4ac   :  { %v4978_v62 = vpop.f32.mrf.mxu0 }
 0x4ad   :  { %v4979_v63 = vadd.f32 %v4978_v62, %v4977_v59  ;;  %v5000_v0 = vpop.f32.mrf.mxu1 }
 0x4ae   :  { %v4980_v3 = vpop.f32.mrf.mxu0  ;;  %v5825_v5 = vpop.eup %5824  ;;  %v5001_v7 = vadd.f32 %v5000_v0, %v4999_v60 }
 0x4af   :  { %v4186_v6 = vadd.f32 %v4979_v63, %v2733_v61  ;;  %v5002_v2 = vpop.f32.mrf.mxu1 }
 0x4b0   :  { %v5827_v8 = vpop.eup %5826  ;;  %v4981_v1 = vpop.f32.mrf.mxu0 }
 0x4b1   :  { %v4955_v10 = vpack.c.bf16 %v5827_v8, %v5825_v5  ;;  %v4227_v12 = vadd.f32 %v5001_v7, %v4186_v6  ;;  %v4982_v13 = vadd.f32 %v4981_v1, %v4980_v3  ;;  %v5003_v14 = vpop.f32.mrf.mxu1 }
 0x4b2   :  { %v5829_v15 = vpop.eup %5828  ;;  %v5004_v18 = vadd.f32 %v5003_v14, %v5002_v2 }
 0x4b3   :  { %4363 = vst [vmem:[#allocation2 + $0x10] sm:$0xff] %v4955_v10  ;;  %v4937_v51 = vmul.f32 -1.442695, %v4227_v12  ;;  %v4189_v16 = vadd.f32 %v4982_v13, %v2733_v61 }
 0x4b4   :  { %v5831_v17 = vpop.eup %5830 }
 0x4b5   :  { %v4959_v19 = vpack.c.bf16 %v5831_v17, %v5829_v15  ;;  %5832 = vpow2.f32 %v4937_v51  ;;  %v4230_v20 = vadd.f32 %v5004_v18, %v4189_v16 }
 0x4b7   :  { %4368 = vst [vmem:[#allocation2 + $0x2c] sm:$0xff] %v4959_v19  ;;  %v4944_v21 = vmul.f32 -1.442695, %v4230_v20 }
 0x4b9   :  { %5834 = vpow2.f32 %v4944_v21 }
 0x4c2   :  { %v5833_v22 = vpop.eup %5832 }
 0x4c3   :  { %v4281_v23 = vadd.f32 1.0, %v5833_v22 }
 0x4c5   :  { %5836 = vrcp.f32 %v4281_v23 }
 0x4c6   :  { %v5835_v9 = vpop.eup %5834 }
 0x4c7   :  { %v4288_v26 = vadd.f32 1.0, %v5835_v9 }
 0x4c9   :  { %5838 = vrcp.f32 %v4288_v26 }
 0x4d2   :  { %v5837_v4 = vpop.eup %5836 }
 0x4d3   :  { %v4956_v29 = vpack.c.bf16 %v5837_v4, %v5837_v4 }
 0x4d5   :  { %4365 = vst.msk [vmem:[#allocation2 + $0x18] sm:$0xf] %vm4364_vm1, %v4956_v29 }
 0x4d6   :  { %v5839_v31 = vpop.eup %5838 }
 0x4d7   :  { %v4960_v30 = vpack.c.bf16 %v5839_v31, %v5839_v31 }
 0x4d9   :  { %4369 = vst.msk [vmem:[#allocation2 + $0x34] sm:$0xf] %vm4364_vm1, %v4960_v30 }
 0x4da   :  { %5873 = shalt.err (!%p5870_p9)
}
 0x4db   :  { %s5891_s14 = smov 448   ;;  %s5892_s2 = smov 28  }
 0x4dc   :  { %4385 = dma.vmem_to_hbm [thread:$0]  %s4380_s13, 896, %s7652_s10, [#allocation3], %s5891_s14, %s5891_s14, %s5892_s2  }
 0x4dd   :  { %5882 = dma.done.wait [#allocation3], 896  }
 0x4de   :  { %5883 = vsyncadd [#allocation3], 4294966400 }
 0x4df   :  { %5884 = dma.done.wait [#allocation5], 512  }
 0x4e0   :  { %5885 = vsyncadd [#allocation5], 4294966784 }
 0x4e1   :  { %4404 = vsyncpa [#allocation3], 1 }
 0x4e2   :  { %4405 = vsyncpa [#allocation5], 1 }

</bundles_post_ra>
